<compile_context>
chip_gen: v6e
topology: v6e:2x2x1
jax: 0.10.0
libtpu: 0.0.40
codegen_flags: <defaults>
</compile_context>

<pallas_src>
import functools

import jax
import jax.numpy as jnp
import numpy as np
from jax.experimental import pallas as pl
from jax.experimental.pallas import tpu as pltpu


def _shift_conv_kernel(x_ref, w_ref, b_ref, o_ref, *, k, s, W, TH, fuse_taps):
    """One (batch, H-tile) step.

    x_ref: (1, Hp, Wp, C)   H-padded ('same') and W-padded (shift) per-batch input
    w_ref: (3*k*C, O)       fused, group/tap zero-masked weights   (fuse_taps=True)
           (k, 3*C, O)      per-tap, group zero-masked weights     (fuse_taps=False)
    b_ref: (1, O)           f32 bias
    o_ref: (1, TH, W, O)    output tile
    """
    t = pl.program_id(1)
    C = x_ref.shape[-1]
    O = o_ref.shape[-1]
    THK = TH + k - 1                       # output rows + (k-1) halo rows

    # Rows of the H-padded input needed for this output tile (static-size slice
    # of the resident per-batch block).
    row0 = pl.multiple_of(t * TH, TH)
    xt = x_ref[0, pl.ds(row0, THK), :, :]  # (THK, Wp, C)

    # The roll + zero-fill of the PyTorch forward == three static W-windows of
    # the zero-padded input:
    #   static group   : cols [s,  s+W)
    #   negative roll  : cols [2s, 2s+W)   (left shift, zeros on the right)
    #   positive roll  : cols [0,  W)      (right shift, zeros on the left)
    # Channel-group selection is folded into the weights (rows outside a group
    # are zero), so no iota / where select is needed here.
    def windows(rows):                     # (rows, Wp, C) -> 3 x (rows, W, C)
        return (rows[:, s:s + W, :],
                rows[:, 2 * s:2 * s + W, :],
                rows[:, 0:W, :])

    if fuse_taps:
        parts = []
        for dh in range(k):                # static, unrolled
            parts.extend(windows(xt[dh:dh + TH]))
        a = jnp.concatenate(parts, axis=-1)                 # (TH, W, 3*k*C)
        acc = jnp.dot(a.reshape(TH * W, 3 * k * C), w_ref[...],
                      preferred_element_type=jnp.float32)   # one fat-K MXU dot
    else:
        acc = None
        for dh in range(k):                # static, unrolled
            a = jnp.concatenate(windows(xt[dh:dh + TH]), axis=-1)  # (TH, W, 3C)
            p = jnp.dot(a.reshape(TH * W, 3 * C), w_ref[dh],
                        preferred_element_type=jnp.float32)
            acc = p if acc is None else acc + p

    acc = acc + b_ref[...]                 # f32 bias (pre-cast in the wrapper)
    o_ref[0] = acc.reshape(TH, W, O).astype(o_ref.dtype)


def _pick_block_h(H, W, *, target_m=1024, max_rows=256):
    """Smallest divisor of H with TH*W >= target_m (MXU M fill), bounded by a
    VMEM-derived row cap; else the largest divisor that fits the cap."""
    divs = [d for d in range(1, H + 1) if H % d == 0]
    target_rows = max(1, -(-target_m // max(W, 1)))
    for d in divs:                                   # ascending
        if target_rows <= d <= max_rows:
            return d
    small = [d for d in divs if d <= max_rows]
    return small[-1] if small else H


def shift_conv(x_nchw, weight, bias, *, shift_len=1,
               compute_dtype=jnp.bfloat16, block_h=None, fuse_taps=None):
    """ShiftConv forward (shift_axis='W').

    x_nchw: (B, C, H, W); weight: (O, C, k, 1); bias: (O,). Returns (B, O, H, W).
    """
    B, C, H, W = x_nchw.shape
    O, Ci, k, kw = weight.shape
    assert Ci == C and kw == 1, "only (k,1) kernels are supported"
    assert shift_len >= 1, "shift_len must be >= 1"
    s = shift_len
    C2, C4 = C // 2, C // 4                # degenerate (zero-size) groups are
                                           # handled naturally by the zero rows.

    # PyTorch padding='same' for a (k,1) kernel, stride 1.
    pad_t = (k - 1) // 2
    pad_b = (k - 1) - pad_t
    Hp = H + (k - 1)
    Wp = W + 2 * s

    # Lane-pad O only when it is already large; for small O masked stores are
    # far cheaper than inflating HBM writeback by O_pad/O.
    O_pad = ((O + 127) // 128) * 128 if O >= 128 else O

    cdt = compute_dtype if compute_dtype is not None else x_nchw.dtype
    cbytes = jnp.dtype(cdt).itemsize
    out_dtype = x_nchw.dtype
    obytes = jnp.dtype(out_dtype).itemsize

    # Fuse all taps into one fat-K dot while K stays small vs. the MXU width.
    if fuse_taps is None:
        fuse_taps = (3 * k * C) <= 512

    # H-tile size: target M = TH*W >= ~1024, bounded by a per-step VMEM budget.
    if block_h is not None and H % block_h == 0:
        TH = block_h
    else:
        per_row = W * (2 * O_pad * obytes + 3 * k * C * cbytes + O_pad * 4)
        max_rows = max(1, (12 * 1024 * 1024) // max(per_row, 1))
        TH = _pick_block_h(H, W, target_m=1024, max_rows=max_rows)
    n_h = H // TH

    # --- wrapper glue: layout, 'same' H-pad, shift W-pad, dtype casts ---
    x = jnp.transpose(x_nchw, (0, 2, 3, 1)).astype(cdt)            # NCHW -> NHWC
    x = jnp.pad(x, ((0, 0), (pad_t, pad_b), (s, s), (0, 0)))       # (B, Hp, Wp, C)

    # weight (O, C, k, 1) -> per-tap, per-group zero-masked (k, 3, C, O):
    # row (dh, g, c) carries weight[o, c, dh] iff channel c belongs to group g.
    w_t = jnp.transpose(weight[:, :, :, 0], (2, 1, 0)).astype(cdt)  # (k, C, O)
    gid = np.zeros((C,), np.int32)
    gid[C2:C2 + C4] = 1
    gid[C2 + C4:] = 2
    gmask = (np.arange(3)[:, None] == gid[None, :])                 # (3, C) 0/1
    w_g = w_t[:, None, :, :] * jnp.asarray(gmask, dtype=cdt)[None, :, :, None]
    if O_pad != O:
        w_g = jnp.pad(w_g, ((0, 0), (0, 0), (0, 0), (0, O_pad - O)))
    w_in = (w_g.reshape(3 * k * C, O_pad) if fuse_taps
            else w_g.reshape(k, 3 * C, O_pad))
    b_in = jnp.pad(bias.astype(jnp.float32), (0, O_pad - O)).reshape(1, O_pad)

    # VMEM budget derived from actual block sizes (not a hard-coded constant).
    vmem_needed = (2 * Hp * Wp * C * cbytes                  # input block (dbl-buffered)
                   + 2 * int(np.prod(w_in.shape)) * cbytes   # weights
                   + 2 * O_pad * 4                           # bias
                   + 2 * TH * W * O_pad * obytes             # output tile (dbl-buffered)
                   + TH * W * (3 * k * C * cbytes + O_pad * 4))  # in-kernel A + f32 acc
    try:
        phys_vmem = pltpu.get_tpu_info().vmem_capacity_bytes
    except Exception:
        phys_vmem = 64 * 1024 * 1024
    vmem_limit = int(min(phys_vmem - (4 << 20),
                         max(32 * 1024 * 1024, 2 * vmem_needed)))

    cost = pl.CostEstimate(
        flops=2 * B * H * W * k * C * O,
        transcendentals=0,
        bytes_accessed=(x.size * cbytes
                        + int(np.prod(w_in.shape)) * cbytes
                        + O_pad * 4
                        + B * H * W * O_pad * obytes))

    kernel = functools.partial(_shift_conv_kernel, k=k, s=s, W=W, TH=TH,
                               fuse_taps=fuse_taps)
    nd_w = w_in.ndim

    out_nhwc = pl.pallas_call(
        kernel,
        out_shape=jax.ShapeDtypeStruct((B, H, W, O_pad), out_dtype),
        grid=(B, n_h),
        in_specs=[
            # Per-batch input block; index_map is constant over the H-tile axis,
            # so the DMA is skipped on consecutive t steps (block re-used).
            pl.BlockSpec((1, Hp, Wp, C), lambda bi, ti: (bi, 0, 0, 0)),
            pl.BlockSpec(w_in.shape, lambda bi, ti, _n=nd_w: (0,) * _n),
            pl.BlockSpec((1, O_pad), lambda bi, ti: (0, 0)),
        ],
        out_specs=pl.BlockSpec((1, TH, W, O_pad), lambda bi, ti: (bi, ti, 0, 0)),
        compiler_params=pltpu.CompilerParams(
            dimension_semantics=("parallel", "parallel"),
            vmem_limit_bytes=vmem_limit),
        cost_estimate=cost,
    )(x, w_in, b_in)

    out = out_nhwc if O_pad == O else out_nhwc[..., :O]            # drop lane pad
    return jnp.transpose(out, (0, 3, 1, 2))                        # NHWC -> NCHW


def _reference(x, weight, bias, shift_len):
    """Pure-JAX reference mirroring the PyTorch forward (f32)."""
    B, C, H, W = x.shape
    C2, C4 = C // 2, C // 4
    static = x[:, :C2]
    neg = jnp.roll(x[:, C2:C2 + C4], -shift_len, axis=3)
    neg = neg.at[:, :, :, -shift_len:].set(0.0)
    pos = jnp.roll(x[:, C2 + C4:], shift_len, axis=3)
    pos = pos.at[:, :, :, :shift_len].set(0.0)
    xc = jnp.concatenate([static, neg, pos], axis=1)
    k = weight.shape[2]
    pad_t = (k - 1) // 2
    pad_b = (k - 1) - pad_t
    out = jax.lax.conv_general_dilated(
        xc, weight, window_strides=(1, 1),
        padding=((pad_t, pad_b), (0, 0)),
        dimension_numbers=("NCHW", "OIHW", "NCHW"),
        precision=jax.lax.Precision.HIGHEST)
    return out + bias[None, :, None, None]


if __name__ == "__main__":
    B, C, H, W = 2, 8, 16, 16
    O, k, shift_len = 8, 3, 1

    key = jax.random.PRNGKey(0)
    kx, kw_, kb = jax.random.split(key, 3)
    x = jax.random.normal(kx, (B, C, H, W), dtype=jnp.float32)
    weight = jax.random.normal(kw_, (O, C, k, 1), dtype=jnp.float32) / np.sqrt(C * k)
    bias = jax.random.normal(kb, (O,), dtype=jnp.float32) * 0.1

    # Kernel computes in bf16 (MXU-native) with f32 accumulation, so compare
    # against the f32 reference evaluated on the same bf16-rounded inputs.
    x_r = x.astype(jnp.bfloat16).astype(jnp.float32)
    w_r = weight.astype(jnp.bfloat16).astype(jnp.float32)
    ref = _reference(x_r, w_r, bias, shift_len)

    # Default config: fused fat-K tap/group matmul, auto H-tile.
    out = jax.block_until_ready(shift_conv(x, weight, bias, shift_len=shift_len))
    np.testing.assert_allclose(np.asarray(out), np.asarray(ref),
                               rtol=2e-3, atol=2e-3)

    # Also exercise the per-tap (unfused) path and a multi-tile H grid with halo.
    out2 = jax.block_until_ready(
        shift_conv(x, weight, bias, shift_len=shift_len,
                   fuse_taps=False, block_h=8))
    np.testing.assert_allclose(np.asarray(out2), np.asarray(ref),
                               rtol=2e-3, atol=2e-3)

    print("KERNEL_OK")
</pallas_src>

<mosaic_0001>
module attributes {stable_mosaic.version = 11 : i64} {
  func.func @_shift_conv_kernel(%arg0: i32, %arg1: i32, %arg2: memref<1x18x18x8xbf16, #tpu.memory_space<vmem>>, %arg3: memref<72x8xbf16, #tpu.memory_space<vmem>>, %arg4: memref<1x8xf32, #tpu.memory_space<vmem>>, %arg5: memref<1x16x16x8xf32, #tpu.memory_space<vmem>>) attributes {dimension_semantics = [#tpu.dimension_semantics<parallel>, #tpu.dimension_semantics<parallel>], iteration_bounds = array<i64: 2, 1>, scalar_prefetch = 0 : i64, scratch_operands = 0 : i64, tpu.core_type = #tpu.core_type<tc>, window_params = [{transform_indices = @transform_0, window_bounds = array<i64: 1, 18, 18, 8>}, {pipeline_mode = #tpu.pipeline_mode<synchronous>, transform_indices = @transform_1, window_bounds = array<i64: 72, 8>}, {pipeline_mode = #tpu.pipeline_mode<synchronous>, transform_indices = @transform_2, window_bounds = array<i64: 1, 8>}, {transform_indices = @transform_3, window_bounds = array<i64: 1, 16, 16, 8>}]} {
    %c16_i32 = arith.constant 16 : i32
    %0 = arith.muli %arg1, %c16_i32 : i32
    %1 = tpu.assume_multiple %0, 16 : i32
    %c0 = arith.constant 0 : index
    %2 = arith.index_cast %1 : i32 to index
    %c0_0 = arith.constant 0 : index
    %c0_1 = arith.constant 0 : index
    %3 = vector.load %arg2[%c0, %2, %c0_0, %c0_1] : memref<1x18x18x8xbf16, #tpu.memory_space<vmem>>, vector<1x18x18x8xbf16>
    %4 = vector.shape_cast %3 : vector<1x18x18x8xbf16> to vector<18x18x8xbf16>
    %5 = vector.extract_strided_slice %4 {offsets = [0, 0, 0], sizes = [16, 18, 8], strides = [1, 1, 1]} : vector<18x18x8xbf16> to vector<16x18x8xbf16>
    %6 = vector.extract_strided_slice %5 {offsets = [0, 1, 0], sizes = [16, 16, 8], strides = [1, 1, 1]} : vector<16x18x8xbf16> to vector<16x16x8xbf16>
    %7 = vector.extract_strided_slice %5 {offsets = [0, 2, 0], sizes = [16, 16, 8], strides = [1, 1, 1]} : vector<16x18x8xbf16> to vector<16x16x8xbf16>
    %8 = vector.extract_strided_slice %5 {offsets = [0, 0, 0], sizes = [16, 16, 8], strides = [1, 1, 1]} : vector<16x18x8xbf16> to vector<16x16x8xbf16>
    %9 = vector.extract_strided_slice %4 {offsets = [1, 0, 0], sizes = [16, 18, 8], strides = [1, 1, 1]} : vector<18x18x8xbf16> to vector<16x18x8xbf16>
    %10 = vector.extract_strided_slice %9 {offsets = [0, 1, 0], sizes = [16, 16, 8], strides = [1, 1, 1]} : vector<16x18x8xbf16> to vector<16x16x8xbf16>
    %11 = vector.extract_strided_slice %9 {offsets = [0, 2, 0], sizes = [16, 16, 8], strides = [1, 1, 1]} : vector<16x18x8xbf16> to vector<16x16x8xbf16>
    %12 = vector.extract_strided_slice %9 {offsets = [0, 0, 0], sizes = [16, 16, 8], strides = [1, 1, 1]} : vector<16x18x8xbf16> to vector<16x16x8xbf16>
    %13 = vector.extract_strided_slice %4 {offsets = [2, 0, 0], sizes = [16, 18, 8], strides = [1, 1, 1]} : vector<18x18x8xbf16> to vector<16x18x8xbf16>
    %14 = vector.extract_strided_slice %13 {offsets = [0, 1, 0], sizes = [16, 16, 8], strides = [1, 1, 1]} : vector<16x18x8xbf16> to vector<16x16x8xbf16>
    %15 = vector.extract_strided_slice %13 {offsets = [0, 2, 0], sizes = [16, 16, 8], strides = [1, 1, 1]} : vector<16x18x8xbf16> to vector<16x16x8xbf16>
    %16 = vector.extract_strided_slice %13 {offsets = [0, 0, 0], sizes = [16, 16, 8], strides = [1, 1, 1]} : vector<16x18x8xbf16> to vector<16x16x8xbf16>
    %17 = tpu.concatenate %6, %7, %8, %10, %11, %12, %14, %15, %16 in 2 : vector<16x16x8xbf16>, vector<16x16x8xbf16>, vector<16x16x8xbf16>, vector<16x16x8xbf16>, vector<16x16x8xbf16>, vector<16x16x8xbf16>, vector<16x16x8xbf16>, vector<16x16x8xbf16>, vector<16x16x8xbf16> -> vector<16x16x72xbf16>
    %18 = vector.shape_cast %17 : vector<16x16x72xbf16> to vector<256x72xbf16>
    %c0_2 = arith.constant 0 : index
    %c0_3 = arith.constant 0 : index
    %19 = vector.load %arg3[%c0_2, %c0_3] : memref<72x8xbf16, #tpu.memory_space<vmem>>, vector<72x8xbf16>
    %cst = arith.constant dense<0.000000e+00> : vector<256x8xf32>
    %20 = tpu.matmul %18, %19, %cst {dimension_numbers = #tpu.dot_dimension_numbers<[1], [0], [0], [1], [0, 0, 1, 1], [], []>} : vector<256x72xbf16>, vector<72x8xbf16>, vector<256x8xf32> -> vector<256x8xf32>
    %c0_4 = arith.constant 0 : index
    %c0_5 = arith.constant 0 : index
    %21 = vector.load %arg4[%c0_4, %c0_5] : memref<1x8xf32, #tpu.memory_space<vmem>>, vector<1x8xf32>
    %22 = vector.broadcast %21 : vector<1x8xf32> to vector<256x8xf32>
    %23 = arith.addf %20, %22 : vector<256x8xf32>
    %24 = vector.shape_cast %23 : vector<256x8xf32> to vector<16x16x8xf32>
    %c0_6 = arith.constant 0 : index
    %c0_7 = arith.constant 0 : index
    %c0_8 = arith.constant 0 : index
    %c0_9 = arith.constant 0 : index
    %25 = vector.load %arg5[%c0_6, %c0_7, %c0_8, %c0_9] : memref<1x16x16x8xf32, #tpu.memory_space<vmem>>, vector<1x16x16x8xf32>
    %26 = vector.shape_cast %25 : vector<1x16x16x8xf32> to vector<16x16x8xf32>
    %27 = vector.shape_cast %24 : vector<16x16x8xf32> to vector<1x16x16x8xf32>
    tpu.vector_store %arg5[%c0_6, %c0_7, %c0_8, %c0_9], %27 {strides = array<i32>} : memref<1x16x16x8xf32, #tpu.memory_space<vmem>>, vector<1x16x16x8xf32>,
    return
  }
  func.func @transform_0(%arg0: i32, %arg1: i32) -> (i32, i32, i32, i32) {
    %c0_i32 = arith.constant 0 : i32
    %c0_i32_0 = arith.constant 0 : i32
    %c0_i32_1 = arith.constant 0 : i32
    %c0_i32_2 = arith.constant 0 : i32
    return %arg0, %c0_i32, %c0_i32_0, %c0_i32_1 : i32, i32, i32, i32
  }
  func.func @transform_1(%arg0: i32, %arg1: i32) -> (i32, i32) {
    %c0_i32 = arith.constant 0 : i32
    %c0_i32_0 = arith.constant 0 : i32
    %c0_i32_1 = arith.constant 0 : i32
    return %c0_i32, %c0_i32_0 : i32, i32
  }
  func.func @transform_2(%arg0: i32, %arg1: i32) -> (i32, i32) {
    %c0_i32 = arith.constant 0 : i32
    %c0_i32_0 = arith.constant 0 : i32
    %c0_i32_1 = arith.constant 0 : i32
    return %c0_i32, %c0_i32_0 : i32, i32
  }
  func.func @transform_3(%arg0: i32, %arg1: i32) -> (i32, i32, i32, i32) {
    %c0_i32 = arith.constant 0 : i32
    %c0_i32_0 = arith.constant 0 : i32
    %c0_i32_1 = arith.constant 0 : i32
    return %arg0, %arg1, %c0_i32, %c0_i32_0 : i32, i32, i32, i32
  }
}

</mosaic_0001>

<bundles_post_ra>
// kernel: tpu_custom_call.1
= control target key start
LH: loop header
LB: loop body
LE: loop exit
PB: predicated region body
PF: predicated region fallthrough
CT: control target
= control target key end

     0   :  { %s2547_s12 = smov 0   ;;  %s2549_s13 = smov 0   ;;  %s4518_s0 = inlined_call_operand.vmem [shape: bf16[2,18,18,8], index: 0, kind: input, shape index: {}]   ;;  %s4519_s1 = inlined_call_operand.vmem [shape: bf16[72,8], index: 1, kind: input, shape index: {}]   ;;  %s4520_s2 = inlined_call_operand.vmem [shape: f32[1,8], index: 2, kind: input, shape index: {}]   ;;  %s4521_s3 = inlined_call_operand.vmem [shape: f32[2,16,16,8], index: 3, kind: output, shape index: {}]  }
   0x1   :  { %s2551_s14 = smov 0  }
   0x2 LB: > { %s25_s15 = sadd.s32 1, %s2513_s13  ;;  %p2262_p0 = scmp.ge.s32.totalorder %s2517_s14, 1  ;;  %s2517_s14 = sphi %s2551_s14, %s13_s14   ;;  %s2513_s13 = sphi %s2549_s13, %s4924_s13   ;;  %s2509_s12 = sphi %s2547_s12, %s4923_s12  }
   0x3   : > { %p27_p1 = scmp.ge.s32.totalorder %s25_s15, 2  ;;  %p151_p2 = scmp.lt.s32.totalorder %s2517_s14, 3 }
   0x5   : > { %s4926_s15 = smov (%p27_p1, %s25_s15), 0  ;;  %p152_p3 = pnand %p2262_p0, %p151_p2 }
   0x7   : > { %155 = sbr.rel (%p152_p3) target bundleno = 853 (0x355), region = 32 }
   0xc   : > { %p180_p4 = scmp.lt.s32.totalorder %s2509_s12, 1  ;;  %vm383_vm0 = vsmask.f32 7424  ;;  %s2519_s20 = smov 8   ;;  %vm1200_vm1 = vcmask 64512   ;;  %vm1265_vm2 = vcmask 130048  }
   0xd   : > { %s2520_s21 = smov 16   ;;  %s2521_s22 = smov 24   ;;  %vm1330_vm3 = vcmask 195584   ;;  %vm1972_vm4 = vcmask 1043456   ;;  %vm1460_vm5 = vcmask 326656   ;;  %vm1395_vm6 = vcmask 261120  }
   0xe   : > { %s4928_s12 = smov (!%p180_p4, %s2509_s12), 1  ;;  %s2522_s23 = smov 32   ;;  %vm1590_vm7 = vcmask 457728   ;;  %vm1525_vm8 = vcmask 392192   ;;  %vm1655_vm9 = vcmask 523264   ;;  %vm1923_vm10 = vcmask 588800  }
   0xf   : > { %s2402_s16 = smul.u32 216, %s4928_s12  ;;  %s2523_s24 = smov 40  }
  0x10   : > { %s2524_s25 = smov 48   ;;  %s2525_s26 = smov 56  }
  0x11   : > { %s2571_s19 = scalar_lea.vmem %s4518_s0, %s2402_s16  ;;  %s2526_s29 = smov 64  }
  0x12   : > { %v2574_v0 = vld [vmem:[%s2571_s19 + $0x14] ss:$0 sps:$4 sm:$0x11]   ;;  %v2577_v1 = vld [vmem:[%s2571_s19] sm:$0xff]   ;;  %v2581_v3 = vld [vmem:[%s2571_s19 + $0x18] sm:$0xff]   ;;  %s2326_s11 = sshll.u32 %s4928_s12, 8 }
  0x13   : > { %v2436_v2 = vld [vmem:[%s2571_s19 + $0x8] ss:$0 sps:$4 sm:$0x11]   ;;  %v4522_v4 = vshrl.u32 %v2574_v0, 16  ;;  %v4547_v7 = vshrl.u32 %v2577_v1, 16  ;;  %v4546_v9 = vshll.u32 %v2577_v1, 16 }
  0x14   : > { %v2585_v5 = vld [vmem:[%s2571_s19 + $0x20] ss:$0 sps:$4 sm:$0x11]   ;;  %v396_v6 = vshrl.u32 %v2436_v2, 16  ;;  %v392_v10 = vshll.u32 %v2436_v2, 16  ;;  %v4541_v11 = vshrl.u32 %v2581_v3, 16 }
  0x15   : > { %614 = vrot.lane.b32.xlu1 %v4522_v4, %s2519_s20  ;;  %v2592_v8 = vshrl.u32 %v2585_v5, 16  ;;  %v2598_v12 = vld [vmem:[%s2571_s19 + $0x2c] ss:$0 sps:$4 sm:$0x11]   ;;  %v4538_v13 = vshll.u32 %v2581_v3, 16  ;;  %v389_v14 = vrot.slane %v4546_v9, 1 }
  0x16   : > { %610 = vrot.lane.b32.xlu0 %v396_v6, %s2519_s20  ;;  %v394_v15 = vrot.slane %v392_v10, 1  ;;  %v420_v16 = vshll.u32 %v2585_v5, 16  ;;  %v2605_v17 = vld [vmem:[%s2571_s19 + $0x24] sm:$0xff]   ;;  %v2608_v18 = vshrl.u32 %v2598_v12, 16  ;;  %v434_v26 = vshll.u32 %v2598_v12, 16  ;;  %v2625_v27 = vld [vmem:[%s2571_s19 + $0xc] sm:$0xff]  }
  0x17   : > { %v417_v19 = vrot.slane %v4538_v13, 1  ;;  %v390_v20 = vor.u32 %v389_v14, %v4547_v7  ;;  %v2617_v22 = vld [vmem:[%s2571_s19 + $0x38] ss:$0 sps:$4 sm:$0x11]   ;;  %v4537_v24 = vshrl.u32 %v2605_v17, 16  ;;  %v4536_v25 = vshll.u32 %v2605_v17, 16 }
  0x18   : > { %v422_v21 = vrot.slane %v420_v16, 1  ;;  %v406_v29 = vshll.u32 %v2574_v0, 16  ;;  %v2631_v30 = vshrl.u32 %v2617_v22, 16  ;;  %v436_v32 = vrot.slane %v434_v26, 1  ;;  %v2636_v33 = vld [vmem:[%s2571_s19 + $0x30] sm:$0xff]   ;;  %v2647_v38 = vld [vmem:[%s2571_s19 + $0x3c] sm:$0xff]  }
  0x19   : > { %618 = vrot.lane.b32.xlu1 %v2592_v8, %s2519_s20  ;;  %v418_v23 = vor.u32 %v417_v19, %v4541_v11  ;;  %v395_v28 = vsel %vm383_vm0, %v390_v20, %v394_v15  ;;  %v431_v31 = vrot.slane %v4536_v25, 1  ;;  %v4543_v35 = vshrl.u32 %v2625_v27, 16  ;;  %v2654_v42 = vld [vmem:[%s2571_s19 + $0x44] ss:$0 sps:$4 sm:$0x11]   ;;  %v2657_v43 = vld [vmem:[%s2571_s19 + $0x48] sm:$0xff]  }
  0x1a   : > { %608 = vrot.lane.b32.xlu0 %v395_v28, %s2519_s20  ;;  %4654 = vst [vmem:[#allocation2_spill] sm:$0xff] %v2631_v30  ;;  %v4542_v36 = vshll.u32 %v2625_v27, 16  ;;  %v448_v37 = vshll.u32 %v2617_v22, 16  ;;  %v4535_v40 = vshrl.u32 %v2636_v33, 16  ;;  %v4534_v41 = vshll.u32 %v2636_v33, 16  ;;  %v2669_v49 = vld [vmem:[%s2571_s19 + $0x54] sm:$0xff]  }
  0x1b   : > { %v2641_v34 = vsel %vm383_vm0, %v418_v23, %v422_v21  ;;  %v432_v39 = vor.u32 %v431_v31, %v4537_v24  ;;  %v408_v45 = vrot.slane %v406_v29, 1  ;;  %v4531_v51 = vshrl.u32 %v2647_v38, 16  ;;  %v2679_v54 = vld [vmem:[%s2571_s19 + $0x50] ss:$0 sps:$4 sm:$0x11]   ;;  %v2694_v62 = vld [vmem:[%s2571_s19 + $0x60] sm:$0xff]  }
  0x1c   : > { %v403_v44 = vrot.slane %v4542_v36, 1  ;;  %v445_v47 = vrot.slane %v4534_v41, 1  ;;  %v450_v48 = vrot.slane %v448_v37, 1  ;;  %v4530_v52 = vshll.u32 %v2647_v38, 16  ;;  %v2871_v7 = vld [vmem:[%s2571_s19 + $0xb4] sm:$0xff]  }
  0x1d   : > { %622 = vrot.lane.b32.xlu1 %v2608_v18, %s2519_s20  ;;  %v2664_v46 = vsel %vm383_vm0, %v432_v39, %v436_v32  ;;  %v462_v53 = vshll.u32 %v2654_v42, 16  ;;  %v2684_v56 = vshrl.u32 %v2654_v42, 16  ;;  %v4528_v57 = vshll.u32 %v2657_v43, 16  ;;  %v2702_v6 = vld [vmem:[%s2571_s19 + $0x5c] ss:$0 sps:$4 sm:$0x11]  }
  0x1e   : > { %616 = vrot.lane.b32.xlu0 %v2641_v34, %s2519_s20  ;;  %v404_v50 = vor.u32 %v403_v44, %v4543_v35  ;;  %v446_v55 = vor.u32 %v445_v47, %v4535_v40  ;;  %v459_v59 = vrot.slane %v4530_v52, 1  ;;  %v4529_v61 = vshrl.u32 %v2657_v43, 16  ;;  %v2713_v16 = vld [vmem:[%s2571_s19 + $0x68] ss:$0 sps:$4 sm:$0x11]   ;;  %v2733_v32 = vld [vmem:[%s2571_s19 + $0x6c] sm:$0xff]  }
  0x1f   : > { %4655 = vst [vmem:[#allocation3_spill] sm:$0xff] %v2684_v56  ;;  %v464_v60 = vrot.slane %v462_v53, 1  ;;  %v473_v63 = vrot.slane %v4528_v57, 1  ;;  %v476_v2 = vshll.u32 %v2679_v54, 16  ;;  %v4526_v10 = vshll.u32 %v2669_v49, 16  ;;  %4673 = vst [vmem:[#allocation21_spill] sm:$0xff] %v2871_v7 }
  0x20   : > { %v2688_v58 = vsel %vm383_vm0, %v404_v50, %v408_v45  ;;  %v2708_v14 = vsel %vm383_vm0, %v446_v55, %v450_v48  ;;  %v460_v15 = vor.u32 %v459_v59, %v4531_v51  ;;  %v4527_v19 = vshrl.u32 %v2669_v49, 16  ;;  %v2740_v44 = vld [vmem:[%s2571_s19 + $0x74] ss:$0 sps:$4 sm:$0x11]   ;;  %v2756_v59 = vld [vmem:[%s2571_s19 + $0x78] sm:$0xff]  }
  0x21   : > { %626 = vrot.lane.b32.xlu1 %v2631_v30, %s2519_s20  ;;  %4656 = vst [vmem:[#allocation4_spill] sm:$0xff] %v2708_v14  ;;  %v2719_v20 = vshrl.u32 %v2679_v54, 16  ;;  %v474_v21 = vor.u32 %v473_v63, %v4529_v61  ;;  %v4523_v23 = vshll.u32 %v2694_v62, 16  ;;  %v478_v28 = vrot.slane %v476_v2, 1  ;;  %v2802_v61 = vld [vmem:[%s2571_s19 + $0x90] sm:$0xff]  }
  0x22   : > { %620 = vrot.lane.b32.xlu0 %v2664_v46, %s2519_s20  ;;  %v2727_v26 = vsel %vm383_vm0, %v460_v15, %v464_v60  ;;  %v487_v29 = vrot.slane %v4526_v10, 1  ;;  %v490_v31 = vshll.u32 %v2702_v6, 16  ;;  %v2736_v37 = vshrl.u32 %v2702_v6, 16  ;;  %v2759_v60 = vld [vmem:[%s2571_s19 + $0x80] ss:$0 sps:$4 sm:$0x11]  }
  0x23   : > { %4657 = vst [vmem:[#allocation5_spill] sm:$0xff] %v2719_v20  ;;  %4658 = vst [vmem:[#allocation6_spill] sm:$0xff] %v2727_v26  ;;  %v4525_v39 = vshrl.u32 %v2694_v62, 16  ;;  %v501_v45 = vrot.slane %v4523_v23, 1  ;;  %v504_v47 = vshll.u32 %v2713_v16, 16  ;;  %v2750_v48 = vsel %vm383_vm0, %v474_v21, %v478_v28  ;;  %v2779_v23 = vld [vmem:[%s2571_s19 + $0x84] sm:$0xff]  }
  0x24   : > { %4659 = vst [vmem:[#allocation7_spill] sm:$0xff] %v2736_v37  ;;  %4660 = vst [vmem:[#allocation8_spill] sm:$0xff] %v2750_v48  ;;  %v488_v50 = vor.u32 %v487_v29, %v4527_v19  ;;  %v492_v53 = vrot.slane %v490_v31, 1  ;;  %v4524_v55 = vshll.u32 %v2733_v32, 16  ;;  %v2764_v63 = vshrl.u32 %v2713_v16, 16 }
  0x25   : > { %612 = vrot.lane.b32.xlu1 %v2688_v58, %s2519_s20  ;;  %v502_v2 = vor.u32 %v501_v45, %v4525_v39  ;;  %v506_v15 = vrot.slane %v504_v47, 1  ;;  %v4533_v21 = vshrl.u32 %v2733_v32, 16  ;;  %v518_v31 = vshll.u32 %v2740_v44, 16  ;;  %v2783_v47 = vld [vmem:[%s2571_s19 + $0x8c] ss:$0 sps:$4 sm:$0x11]  }
  0x26   : > { %624 = vrot.lane.b32.xlu0 %v2708_v14, %s2519_s20  ;;  %4661 = vst [vmem:[#allocation9_spill] sm:$0xff] %v2764_v63  ;;  %v2772_v28 = vsel %vm383_vm0, %v488_v50, %v492_v53  ;;  %v515_v29 = vrot.slane %v4524_v55, 1  ;;  %v4532_v4 = vshll.u32 %v2756_v59, 16  ;;  %v532_v45 = vshll.u32 %v2759_v60, 16  ;;  %4665 = vst [vmem:[#allocation13_spill] sm:$0xff] %v2802_v61 }
  0x27   : > { %4662 = vst [vmem:[#allocation10_spill] sm:$0xff] %v2772_v28  ;;  %v2788_v50 = vsel %vm383_vm0, %v502_v2, %v506_v15  ;;  %v2791_v53 = vshrl.u32 %v2740_v44, 16  ;;  %v4540_v55 = vshrl.u32 %v2756_v59, 16  ;;  %v520_v10 = vrot.slane %v518_v31, 1  ;;  %v2815_v31 = vld [vmem:[%s2571_s19 + $0x9c] sm:$0xff]  }
  0x28   : > { %4663 = vst [vmem:[#allocation11_spill] sm:$0xff] %v2788_v50  ;;  %v516_v39 = vor.u32 %v515_v29, %v4533_v21  ;;  %v529_v19 = vrot.slane %v4532_v4, 1  ;;  %v4539_v57 = vshll.u32 %v2779_v23, 16  ;;  %v2805_v2 = vshrl.u32 %v2759_v60, 16  ;;  %4666 = vst [vmem:[#allocation14_spill] sm:$0xff] %v2815_v31 }
  0x29   : > { %630 = vrot.lane.b32.xlu1 %v2684_v56, %s2519_s20  ;;  %4664 = vst [vmem:[#allocation12_spill] sm:$0xff] %v2791_v53  ;;  %v534_v15 = vrot.slane %v532_v45, 1  ;;  %v546_v52 = vshll.u32 %v2783_v47, 16  ;;  %v2809_v51 = vld [vmem:[%s2571_s19 + $0x98] ss:$0 sps:$4 sm:$0x11]  }
  0x2a   : > { %628 = vrot.lane.b32.xlu0 %v2727_v26, %s2519_s20  ;;  %v4545_v29 = vshrl.u32 %v2779_v23, 16  ;;  %v2820_v4 = vsel %vm383_vm0, %v516_v39, %v520_v10  ;;  %v530_v45 = vor.u32 %v529_v19, %v4540_v55  ;;  %v543_v21 = vrot.slane %v4539_v57, 1  ;;  %v2832_v13 = vld [vmem:[%s2571_s19 + $0xa4] ss:$0 sps:$4 sm:$0x11]   ;;  %v2848_v55 = vld [vmem:[%s2571_s19 + $0xa8] sm:$0xff]  }
  0x2b   : > { %4667 = vst [vmem:[#allocation15_spill] sm:$0xff] %v2820_v4  ;;  %v4544_v41 = vshll.u32 %v2802_v61, 16  ;;  %v2828_v40 = vshrl.u32 %v2783_v47, 16  ;;  %v4553_v25 = vshrl.u32 %v2802_v61, 16  ;;  %v548_v24 = vrot.slane %v546_v52, 1  ;;  %4669 = vst [vmem:[#allocation17_spill] sm:$0xff] %v2832_v13 }
  0x2c   : > { %v560_v10 = vshll.u32 %v2809_v51, 16  ;;  %v4548_v19 = vshll.u32 %v2815_v31, 16  ;;  %v2841_v39 = vsel %vm383_vm0, %v530_v45, %v534_v15  ;;  %v544_v57 = vor.u32 %v543_v21, %v4545_v29  ;;  %4670 = vst [vmem:[#allocation18_spill] sm:$0xff] %v2848_v55  ;;  %v2860_v35 = vld [vmem:[%s2571_s19 + $0xb0] ss:$0 sps:$4 sm:$0x11]  }
  0x2d   : > { %634 = vrot.lane.b32.xlu1 %v2719_v20, %s2519_s20  ;;  %4668 = vst [vmem:[#allocation16_spill] sm:$0xff] %v2828_v40  ;;  %v557_v52 = vrot.slane %v4544_v41, 1  ;;  %v2851_v11 = vshrl.u32 %v2809_v51, 16  ;;  %v4554_v36 = vshrl.u32 %v2815_v31, 16  ;;  %v574_v45 = vshll.u32 %v2832_v13, 16  ;;  %4672 = vst [vmem:[#allocation20_spill] sm:$0xff] %v2860_v35 }
  0x2e   : > { %632 = vrot.lane.b32.xlu0 %v2750_v48, %s2519_s20  ;;  %v571_v15 = vrot.slane %v4548_v19, 1  ;;  %v2865_v21 = vsel %vm383_vm0, %v544_v57, %v548_v24  ;;  %v562_v29 = vrot.slane %v560_v10, 1  ;;  %v4555_v9 = vshll.u32 %v2848_v55, 16 }
  0x2f   : > { %4671 = vst [vmem:[#allocation19_spill] sm:$0xff] %v2851_v11  ;;  %v558_v41 = vor.u32 %v557_v52, %v4553_v25  ;;  %v588_v24 = vshll.u32 %v2860_v35, 16  ;;  %v2885_v10 = vshrl.u32 %v2832_v13, 16  ;;  %v2890_v25 = vld [vmem:[%s2571_s19 + $0xbc] ss:$0 sps:$4 sm:$0x11]  }
  0x30   : > { %v572_v19 = vor.u32 %v571_v15, %v4554_v36  ;;  %v585_v52 = vrot.slane %v4555_v9, 1  ;;  %4676 = vst [vmem:[#allocation24_spill] sm:$0xff] %v2890_v25  ;;  %v4560_v15 = vshll.u32 %v2871_v7, 16  ;;  %v2899_v36 = vshrl.u32 %v2860_v35, 16 }
  0x31   : > { %638 = vrot.lane.b32.xlu1 %v2736_v37, %s2519_s20  ;;  %v2882_v57 = vsel %vm383_vm0, %v558_v41, %v562_v29  ;;  %4675 = vst [vmem:[#allocation23_spill] sm:$0xff] %v2885_v10  ;;  %v590_v41 = vrot.slane %v588_v24, 1  ;;  %v4564_v9 = vshrl.u32 %v2871_v7, 16 }
  0x32   : > { %636 = vrot.lane.b32.xlu0 %v2772_v28, %s2519_s20  ;;  %4674 = vst [vmem:[#allocation22_spill] sm:$0xff] %v2882_v57  ;;  %4678 = vst [vmem:[#allocation26_spill] sm:$0xff] %v2899_v36  ;;  %v599_v37 = vrot.slane %v4560_v15, 1  ;;  %v602_v28 = vshll.u32 %v2890_v25, 16  ;;  %v4681_v15 = vshrl.u32 %v2577_v1, 16 }
  0x34   : > { %v600_v24 = vor.u32 %v599_v37, %v4564_v9  ;;  %v4684_v37 = vshrl.u32 %v2625_v27, 16 }
  0x35   : > { %642 = vrot.lane.b32.xlu1 %v2764_v63, %s2519_s20  ;;  %v576_v63 = vrot.slane %v574_v45, 1 }
  0x36   : > { %640 = vrot.lane.b32.xlu0 %v2788_v50, %s2519_s20  ;;  %v4561_v50 = vshrl.u32 %v2848_v55, 16 }
  0x37   : > { %v2896_v45 = vsel %vm383_vm0, %v572_v19, %v576_v63  ;;  %v2917_v19 = vshrl.u32 %v2890_v25, 16 }
  0x38   : > { %4677 = vst [vmem:[#allocation25_spill] sm:$0xff] %v2896_v45  ;;  %v586_v29 = vor.u32 %v585_v52, %v4561_v50  ;;  %v604_v52 = vrot.slane %v602_v28, 1  ;;  %v672_v50 = vrot.slane %v4681_v15, 7  ;;  %v2936_v28 = vrot.slane %v4684_v37, 7 }
  0x39   : > { %646 = vrot.lane.b32.xlu1 %v2791_v53, %s2519_s20  ;;  %4680 = vst [vmem:[#allocation28_spill] sm:$0xff] %v2917_v19  ;;  %v4685_v15 = vshll.u32 %v2625_v27, 16  ;;  %v4690_v37 = vshll.u32 %v2605_v17, 16 }
  0x3a   : > { %644 = vrot.lane.b32.xlu0 %v2820_v4, %s2519_s20  ;;  %v2914_v63 = vsel %vm383_vm0, %v586_v29, %v590_v41  ;;  %v4683_v41 = vshll.u32 %v2577_v1, 16  ;;  %v4687_v1 = vshll.u32 %v2581_v3, 16 }
  0x3b   : > { %4679 = vst [vmem:[#allocation27_spill] sm:$0xff] %v2914_v63 }
  0x3c   : > { %v673_v29 = vor.u32 %v672_v50, %v4683_v41  ;;  %v4688_v41 = vshrl.u32 %v2605_v17, 16 }
  0x3d   : > { %650 = vrot.lane.b32.xlu1 %v2805_v2, %s2519_s20 }
  0x3e   : > { %648 = vrot.lane.b32.xlu0 %v2841_v39, %s2519_s20 }
  0x41   : > { %654 = vrot.lane.b32.xlu1 %v2828_v40, %s2519_s20 }
  0x42   : > { %652 = vrot.lane.b32.xlu0 %v2865_v21, %s2519_s20 }
  0x45   : > { %658 = vrot.lane.b32.xlu1 %v2851_v11, %s2519_s20 }
  0x46   : > { %656 = vrot.lane.b32.xlu0 %v2882_v57, %s2519_s20 }
  0x49   : > { %662 = vrot.lane.b32.xlu1 %v2885_v10, %s2519_s20  ;;  %v4700_v10 = vshrl.u32 %v2657_v43, 16 }
  0x4a   : > { %660 = vrot.lane.b32.xlu0 %v2896_v45, %s2519_s20 }
  0x4b   : > { %v2999_v45 = vrot.slane %v4700_v10, 7  ;;  %v4706_v10 = vshll.u32 %v2669_v49, 16 }
  0x4d   : > { %666 = vrot.lane.b32.xlu1 %v2899_v36, %s2519_s20  ;;  %v2928_v36 = vsel %vm383_vm0, %v600_v24, %v604_v52  ;;  %v2943_v24 = vor.u32 %v2936_v28, %v4685_v15  ;;  %v4686_v52 = vshrl.u32 %v2581_v3, 16  ;;  %4701 = vst [vmem:[#allocation36_spill] sm:$0xff] %v2999_v45 }
  0x4e   : > { %664 = vrot.lane.b32.xlu0 %v2914_v63, %s2519_s20  ;;  %4682 = vst [vmem:[#allocation29_spill] sm:$0xff] %v2928_v36 }
  0x4f   : > { %v2947_v9 = vrot.slane %v4686_v52, 7  ;;  %v4692_v52 = vshrl.u32 %v2636_v33, 16 }
  0x51   : > { %670 = vrot.lane.b32.xlu1 %v2917_v19, %s2519_s20  ;;  %v2973_v19 = vrot.slane %v4692_v52, 7 }
  0x52   : > { %668 = vrot.lane.b32.xlu0 %v2928_v36, %s2519_s20  ;;  %v4696_v36 = vshrl.u32 %v2647_v38, 16  ;;  %s4348_s20 = scalar_lea.vmem %s4521_s3, %s2326_s11 }
  0x53   : > { %4693 = vst [vmem:[#allocation32_spill] sm:$0xff] %v2973_v19 }
  0x54   : > { %v2986_v63 = vrot.slane %v4696_v36, 7  ;;  %v4702_v36 = vshll.u32 %v2657_v43, 16 }
  0x55   : > { %706 = vrot.lane.b32.xlu1 %v672_v50, %s2520_s21  ;;  %v2956_v50 = vor.u32 %v2947_v9, %v4687_v1  ;;  %v4694_v1 = vshll.u32 %v2636_v33, 16 }
  0x56   : > { %704 = vrot.lane.b32.xlu0 %v673_v29, %s2520_s21  ;;  %v2960_v29 = vrot.slane %v4688_v41, 7  ;;  %4697 = vst [vmem:[#allocation34_spill] sm:$0xff] %v2986_v63 }
  0x57   : > { %v2982_v41 = vor.u32 %v2973_v19, %v4694_v1  ;;  %v3008_v1 = vor.u32 %v2999_v45, %v4702_v36 }
  0x58   : > { %4689 = vst [vmem:[#allocation30_spill] sm:$0xff] %v2960_v29  ;;  %v2969_v15 = vor.u32 %v2960_v29, %v4690_v37  ;;  %v4698_v37 = vshll.u32 %v2647_v38, 16 }
  0x59   : > { %710 = vrot.lane.b32.xlu1 %v2936_v28, %s2520_s21  ;;  %4695 = vst [vmem:[#allocation33_spill] sm:$0xff] %v2982_v41  ;;  %4703 = vst [vmem:[#allocation37_spill] sm:$0xff] %v3008_v1 }
  0x5a   : > { %708 = vrot.lane.b32.xlu0 %v2943_v24, %s2520_s21  ;;  %4691 = vst [vmem:[#allocation31_spill] sm:$0xff] %v2969_v15  ;;  %v2995_v52 = vor.u32 %v2986_v63, %v4698_v37 }
  0x5c   : > { %4699 = vst [vmem:[#allocation35_spill] sm:$0xff] %v2995_v52 }
  0x5d   : > { %714 = vrot.lane.b32.xlu1 %v2947_v9, %s2520_s21 }
  0x5e   : > { %712 = vrot.lane.b32.xlu0 %v2956_v50, %s2520_s21 }
  0x61   : > { %718 = vrot.lane.b32.xlu1 %v2960_v29, %s2520_s21  ;;  %v4726_v29 = vshrl.u32 %v2815_v31, 16 }
  0x62   : > { %716 = vrot.lane.b32.xlu0 %v2969_v15, %s2520_s21 }
  0x63   : > { %v3090_v40 = vrot.slane %v4726_v29, 7 }
  0x65   : > { %722 = vrot.lane.b32.xlu1 %v2973_v19, %s2520_s21  ;;  %v4704_v19 = vshrl.u32 %v2669_v49, 16  ;;  %4727 = vst [vmem:[#allocation48_spill] sm:$0xff] %v3090_v40 }
  0x66   : > { %720 = vrot.lane.b32.xlu0 %v2982_v41, %s2520_s21  ;;  %v4722_v41 = vshrl.u32 %v2802_v61, 16 }
  0x67   : > { %v3012_v11 = vrot.slane %v4704_v19, 7  ;;  %v4710_v19 = vshll.u32 %v2694_v62, 16 }
  0x68   : > { %v3077_v57 = vrot.slane %v4722_v41, 7 }
  0x69   : > { %726 = vrot.lane.b32.xlu1 %v2986_v63, %s2520_s21  ;;  %4705 = vst [vmem:[#allocation38_spill] sm:$0xff] %v3012_v11  ;;  %v3021_v37 = vor.u32 %v3012_v11, %v4706_v10  ;;  %v4708_v63 = vshrl.u32 %v2694_v62, 16 }
  0x6a   : > { %724 = vrot.lane.b32.xlu0 %v2995_v52, %s2520_s21  ;;  %4723 = vst [vmem:[#allocation46_spill] sm:$0xff] %v3077_v57 }
  0x6b   : > { %4707 = vst [vmem:[#allocation39_spill] sm:$0xff] %v3021_v37  ;;  %v3025_v52 = vrot.slane %v4708_v63, 7  ;;  %v4714_v63 = vshll.u32 %v2733_v32, 16 }
  0x6d   : > { %730 = vrot.lane.b32.xlu1 %v2999_v45, %s2520_s21  ;;  %4709 = vst [vmem:[#allocation40_spill] sm:$0xff] %v3025_v52  ;;  %v3034_v36 = vor.u32 %v3025_v52, %v4710_v19  ;;  %v4712_v45 = vshrl.u32 %v2733_v32, 16 }
  0x6e   : > { %728 = vrot.lane.b32.xlu0 %v3008_v1, %s2520_s21 }
  0x6f   : > { %4711 = vst [vmem:[#allocation41_spill] sm:$0xff] %v3034_v36  ;;  %v3038_v1 = vrot.slane %v4712_v45, 7  ;;  %v4717_v45 = vshll.u32 %v2756_v59, 16 }
  0x71   : > { %734 = vrot.lane.b32.xlu1 %v3012_v11, %s2520_s21  ;;  %4713 = vst [vmem:[#allocation42_spill] sm:$0xff] %v3038_v1  ;;  %v3047_v10 = vor.u32 %v3038_v1, %v4714_v63  ;;  %v4716_v11 = vshrl.u32 %v2756_v59, 16 }
  0x72   : > { %732 = vrot.lane.b32.xlu0 %v3021_v37, %s2520_s21 }
  0x73   : > { %4715 = vst [vmem:[#allocation43_spill] sm:$0xff] %v3047_v10  ;;  %v3051_v37 = vrot.slane %v4716_v11, 7  ;;  %v4720_v11 = vshll.u32 %v2779_v23, 16 }
  0x75   : > { %738 = vrot.lane.b32.xlu1 %v3025_v52, %s2520_s21  ;;  %v3060_v19 = vor.u32 %v3051_v37, %v4717_v45  ;;  %v4718_v52 = vshrl.u32 %v2779_v23, 16 }
  0x76   : > { %736 = vrot.lane.b32.xlu0 %v3034_v36, %s2520_s21 }
  0x77   : > { %v3064_v36 = vrot.slane %v4718_v52, 7  ;;  %v4724_v52 = vshll.u32 %v2802_v61, 16 }
  0x79   : > { %742 = vrot.lane.b32.xlu1 %v3038_v1, %s2520_s21  ;;  %4719 = vst [vmem:[#allocation44_spill] sm:$0xff] %v3064_v36  ;;  %v3073_v63 = vor.u32 %v3064_v36, %v4720_v11  ;;  %v3086_v45 = vor.u32 %v3077_v57, %v4724_v52  ;;  %v4732_v52 = vshrl.u32 %v2848_v55, 16 }
  0x7a   : > { %740 = vrot.lane.b32.xlu0 %v3047_v10, %s2520_s21 }
  0x7b   : > { %4721 = vst [vmem:[#allocation45_spill] sm:$0xff] %v3073_v63  ;;  %4725 = vst [vmem:[#allocation47_spill] sm:$0xff] %v3086_v45 }
  0x7d   : > { %746 = vrot.lane.b32.xlu1 %v3051_v37, %s2520_s21 }
  0x7e   : > { %744 = vrot.lane.b32.xlu0 %v3060_v19, %s2520_s21 }
  0x81   : > { %750 = vrot.lane.b32.xlu1 %v3064_v36, %s2520_s21  ;;  %v4730_v36 = vshll.u32 %v2815_v31, 16 }
  0x82   : > { %748 = vrot.lane.b32.xlu0 %v3073_v63, %s2520_s21  ;;  %v3107_v63 = vrot.slane %v4732_v52, 7 }
  0x83   : > { %v3103_v15 = vor.u32 %v3090_v40, %v4730_v36  ;;  %v4736_v36 = vshrl.u32 %v2871_v7, 16 }
  0x84   : > { %4733 = vst [vmem:[#allocation52_spill] sm:$0xff] %v3107_v63 }
  0x85   : > { %754 = vrot.lane.b32.xlu1 %v3077_v57, %s2520_s21  ;;  %4731 = vst [vmem:[#allocation51_spill] sm:$0xff] %v3103_v15  ;;  %v3122_v57 = vrot.slane %v4736_v36, 7 }
  0x86   : > { %752 = vrot.lane.b32.xlu0 %v3086_v45, %s2520_s21 }
  0x87   : > { %v3094_v41 = vpop.permute.xlu1 %614  ;;  %4737 = vst [vmem:[#allocation54_spill] sm:$0xff] %v3122_v57 }
  0x88   : > { %4728 = vst [vmem:[#allocation49_spill] sm:$0xff] %v3094_v41  ;;  %v3098_v11 = vpop.permute.xlu0 %610  ;;  %v4734_v41 = vshll.u32 %v2848_v55, 16 }
  0x89   : > { %4729 = vst [vmem:[#allocation50_spill] sm:$0xff] %v3098_v11  ;;  %758 = vrot.lane.b32.xlu1 %v3090_v40, %s2520_s21 }
  0x8a   : > { %756 = vrot.lane.b32.xlu0 %v3103_v15, %s2520_s21  ;;  %v3118_v11 = vor.u32 %v3107_v63, %v4734_v41  ;;  %v4739_v15 = vshll.u32 %v2871_v7, 16 }
  0x8b   : > { %v3111_v29 = vpop.permute.xlu1 %618 }
  0x8c   : > { %4735 = vst [vmem:[#allocation53_spill] sm:$0xff] %v3118_v11  ;;  %v3126_v52 = vpop.permute.xlu0 %608  ;;  %v3135_v45 = vor.u32 %v3122_v57, %v4739_v15 }
  0x8d   : > { %762 = vrot.lane.b32.xlu1 %v3107_v63, %s2520_s21  ;;  %4738 = vst [vmem:[#allocation55_spill] sm:$0xff] %v3126_v52 }
  0x8e   : > { %760 = vrot.lane.b32.xlu0 %v3118_v11, %s2520_s21  ;;  %4740 = vst [vmem:[#allocation56_spill] sm:$0xff] %v3135_v45 }
  0x8f   : > { %v3128_v40 = vpop.permute.xlu1 %622 }
  0x90   : > { %v3139_v41 = vpop.permute.xlu0 %616 }
  0x91   : > { %766 = vrot.lane.b32.xlu1 %v3122_v57, %s2520_s21 }
  0x92   : > { %764 = vrot.lane.b32.xlu0 %v3135_v45, %s2520_s21 }
  0x93   : > { %v3141_v36 = vpop.permute.xlu1 %626 }
  0x94   : > { %v3147_v63 = vpop.permute.xlu0 %620 }
  0x95   : > { %778 = vrot.lane.b32.xlu1 %v2574_v0, %s2521_s22 }
  0x96   : > { %776 = vrot.lane.b32.xlu0 %v2625_v27, %s2521_s22 }
  0x97   : > { %v3149_v52 = vpop.permute.xlu1 %612 }
  0x98   : > { %4741 = vst [vmem:[#allocation57_spill] sm:$0xff] %v3149_v52  ;;  %v3155_v15 = vpop.permute.xlu0 %624 }
  0x99   : > { %782 = vrot.lane.b32.xlu1 %v2585_v5, %s2521_s22 }
  0x9a   : > { %780 = vrot.lane.b32.xlu0 %v2581_v3, %s2521_s22 }
  0x9b   : > { %v3157_v57 = vpop.permute.xlu1 %630 }
  0x9c   : > { %4742 = vst [vmem:[#allocation58_spill] sm:$0xff] %v3157_v57  ;;  %v3163_v45 = vpop.permute.xlu0 %628 }
  0x9d   : > { %786 = vrot.lane.b32.xlu1 %v2598_v12, %s2521_s22  ;;  %4743 = vst [vmem:[#allocation59_spill] sm:$0xff] %v3163_v45 }
  0x9e   : > { %784 = vrot.lane.b32.xlu0 %v2605_v17, %s2521_s22 }
  0x9f   : > { %v3165_v11 = vpop.permute.xlu1 %634 }
  0xa0   : > { %4744 = vst [vmem:[#allocation60_spill] sm:$0xff] %v3165_v11  ;;  %v3171_v27 = vpop.permute.xlu0 %632 }
  0xa1   : > { %790 = vrot.lane.b32.xlu1 %v2617_v22, %s2521_s22  ;;  %4745 = vst [vmem:[#allocation61_spill] sm:$0xff] %v3171_v27 }
  0xa2   : > { %788 = vrot.lane.b32.xlu0 %v2636_v33, %s2521_s22 }
  0xa3   : > { %v3173_v52 = vpop.permute.xlu1 %638 }
  0xa4   : > { %4746 = vst [vmem:[#allocation62_spill] sm:$0xff] %v3173_v52  ;;  %v3179_v57 = vpop.permute.xlu0 %636 }
  0xa5   : > { %794 = vrot.lane.b32.xlu1 %v2654_v42, %s2521_s22  ;;  %4747 = vst [vmem:[#allocation63_spill] sm:$0xff] %v3179_v57 }
  0xa6   : > { %792 = vrot.lane.b32.xlu0 %v2647_v38, %s2521_s22 }
  0xa7   : > { %v3181_v45 = vpop.permute.xlu1 %642 }
  0xa8   : > { %4748 = vst [vmem:[#allocation64_spill] sm:$0xff] %v3181_v45  ;;  %v3187_v11 = vpop.permute.xlu0 %640 }
  0xa9   : > { %798 = vrot.lane.b32.xlu1 %v2679_v54, %s2521_s22  ;;  %4749 = vst [vmem:[#allocation65_spill] sm:$0xff] %v3187_v11 }
  0xaa   : > { %796 = vrot.lane.b32.xlu0 %v2657_v43, %s2521_s22 }
  0xab   : > { %v3189_v27 = vpop.permute.xlu1 %646 }
  0xac   : > { %4750 = vst [vmem:[#allocation66_spill] sm:$0xff] %v3189_v27  ;;  %v3195_v52 = vpop.permute.xlu0 %644 }
  0xad   : > { %802 = vrot.lane.b32.xlu1 %v2702_v6, %s2521_s22  ;;  %4751 = vst [vmem:[#allocation67_spill] sm:$0xff] %v3195_v52 }
  0xae   : > { %800 = vrot.lane.b32.xlu0 %v2669_v49, %s2521_s22 }
  0xaf   : > { %v3197_v57 = vpop.permute.xlu1 %650 }
  0xb0   : > { %v3203_v45 = vpop.permute.xlu0 %648 }
  0xb1   : > { %806 = vrot.lane.b32.xlu1 %v2713_v16, %s2521_s22  ;;  %4752 = vst [vmem:[#allocation68_spill] sm:$0xff] %v3203_v45 }
  0xb2   : > { %804 = vrot.lane.b32.xlu0 %v2694_v62, %s2521_s22 }
  0xb3   : > { %v3205_v11 = vpop.permute.xlu1 %654 }
  0xb4   : > { %v3211_v27 = vpop.permute.xlu0 %652 }
  0xb5   : > { %810 = vrot.lane.b32.xlu1 %v2740_v44, %s2521_s22 }
  0xb6   : > { %808 = vrot.lane.b32.xlu0 %v2733_v32, %s2521_s22 }
  0xb7   : > { %v3213_v52 = vpop.permute.xlu1 %658 }
  0xb8   : > { %v3219_v16 = vpop.permute.xlu0 %656 }
  0xb9   : > { %814 = vrot.lane.b32.xlu1 %v2759_v60, %s2521_s22  ;;  %4753 = vst [vmem:[#allocation69_spill] sm:$0xff] %v3219_v16 }
  0xba   : > { %812 = vrot.lane.b32.xlu0 %v2756_v59, %s2521_s22 }
  0xbb   : > { %v3221_v45 = vpop.permute.xlu1 %662 }
  0xbc   : > { %4754 = vst [vmem:[#allocation70_spill] sm:$0xff] %v3221_v45  ;;  %v3227_v62 = vpop.permute.xlu0 %660 }
  0xbd   : > { %818 = vrot.lane.b32.xlu1 %v2783_v47, %s2521_s22  ;;  %4755 = vst [vmem:[#allocation71_spill] sm:$0xff] %v3227_v62 }
  0xbe   : > { %816 = vrot.lane.b32.xlu0 %v2779_v23, %s2521_s22 }
  0xbf   : > { %v3229_v44 = vpop.permute.xlu1 %666 }
  0xc0   : > { %4756 = vst [vmem:[#allocation72_spill] sm:$0xff] %v3229_v44  ;;  %v3235_v32 = vpop.permute.xlu0 %664 }
  0xc1   : > { %822 = vrot.lane.b32.xlu1 %v2809_v51, %s2521_s22  ;;  %4757 = vst [vmem:[#allocation73_spill] sm:$0xff] %v3235_v32 }
  0xc2   : > { %820 = vrot.lane.b32.xlu0 %v2802_v61, %s2521_s22 }
  0xc3   : > { %v3237_v45 = vpop.permute.xlu1 %670 }
  0xc4   : > { %4758 = vst [vmem:[#allocation74_spill] sm:$0xff] %v3237_v45  ;;  %v3243_v62 = vpop.permute.xlu0 %668  ;;  %v3260_v45 = vld [vmem:[%s2571_s19 + $0xc8] ss:$0 sps:$4 sm:$0x11]  }
  0xc5   : > { %826 = vrot.lane.b32.xlu1 %v2832_v13, %s2521_s22  ;;  %4759 = vst [vmem:[#allocation75_spill] sm:$0xff] %v3243_v62  ;;  %4763 = vst [vmem:[#allocation79_spill] sm:$0xff] %v3260_v45 }
  0xc6   : > { %824 = vrot.lane.b32.xlu0 %v2815_v31, %s2521_s22 }
  0xc7   : > { %v3245_v44 = vpop.permute.xlu1 %706 }
  0xc8   : > { %4760 = vst [vmem:[#allocation76_spill] sm:$0xff] %v3245_v44  ;;  %v3251_v32 = vpop.permute.xlu0 %704 }
  0xc9   : > { %830 = vrot.lane.b32.xlu1 %v2860_v35, %s2521_s22  ;;  %4761 = vst [vmem:[#allocation77_spill] sm:$0xff] %v3251_v32  ;;  %v3269_v35 = vld [vmem:[%s2571_s19 + $0xc0] sm:$0xff]  }
  0xca   : > { %828 = vrot.lane.b32.xlu0 %v2848_v55, %s2521_s22  ;;  %4765 = vst [vmem:[#allocation81_spill] sm:$0xff] %v3269_v35 }
  0xcb   : > { %v3253_v16 = vpop.permute.xlu1 %710 }
  0xcc   : > { %4762 = vst [vmem:[#allocation78_spill] sm:$0xff] %v3253_v16  ;;  %v3262_v62 = vpop.permute.xlu0 %708 }
  0xcd   : > { %834 = vrot.lane.b32.xlu1 %v2890_v25, %s2521_s22  ;;  %4764 = vst [vmem:[#allocation80_spill] sm:$0xff] %v3262_v62  ;;  %v4766_v62 = vshrl.u32 %v2574_v0, 16 }
  0xce   : > { %832 = vrot.lane.b32.xlu0 %v2871_v7, %s2521_s22 }
  0xcf   : > { %v3264_v44 = vpop.permute.xlu1 %714 }
  0xd0   : > { %v3273_v16 = vpop.permute.xlu0 %712 }
  0xd1   : > { %838 = vrot.lane.b32.xlu1 %v3260_v45, %s2521_s22 }
  0xd2   : > { %836 = vrot.lane.b32.xlu0 %v3269_v35, %s2521_s22 }
  0xd3   : > { %v3275_v32 = vpop.permute.xlu1 %718 }
  0xd4   : > { %v3282_v25 = vpop.permute.xlu0 %716 }
  0xd5   : > { %856 = vrot.lane.b32.xlu1 %v4766_v62, %s2522_s23 }
  0xd6   : > { %854 = vrot.lane.b32.xlu0 %v2688_v58, %s2522_s23 }
  0xd7   : > { %v3284_v7 = vpop.permute.xlu1 %722 }
  0xd8   : > { %v3290_v45 = vpop.permute.xlu0 %720 }
  0xd9   : > { %860 = vrot.lane.b32.xlu1 %v2592_v8, %s2522_s23 }
  0xda   : > { %858 = vrot.lane.b32.xlu0 %v2641_v34, %s2522_s23 }
  0xdb   : > { %v3292_v55 = vpop.permute.xlu1 %726 }
  0xdc   : > { %v3298_v0 = vpop.permute.xlu0 %724 }
  0xdd   : > { %864 = vrot.lane.b32.xlu1 %v2608_v18, %s2522_s23 }
  0xde   : > { %862 = vrot.lane.b32.xlu0 %v2664_v46, %s2522_s23 }
  0xdf   : > { %v3300_v62 = vpop.permute.xlu1 %730 }
  0xe0   : > { %v3306_v58 = vpop.permute.xlu0 %728 }
  0xe1   : > { %868 = vrot.lane.b32.xlu1 %v2631_v30, %s2522_s23 }
  0xe2   : > { %866 = vrot.lane.b32.xlu0 %v2708_v14, %s2522_s23 }
  0xe3   : > { %v3308_v35 = vpop.permute.xlu1 %734 }
  0xe4   : > { %v3314_v31 = vpop.permute.xlu0 %732 }
  0xe5   : > { %872 = vrot.lane.b32.xlu1 %v2684_v56, %s2522_s23 }
  0xe6   : > { %870 = vrot.lane.b32.xlu0 %v2727_v26, %s2522_s23 }
  0xe7   : > { %v3316_v13 = vpop.permute.xlu1 %738 }
  0xe8   : > { %4767 = vst [vmem:[#allocation82_spill] sm:$0xff] %v3316_v13  ;;  %v3322_v30 = vpop.permute.xlu0 %736 }
  0xe9   : > { %876 = vrot.lane.b32.xlu1 %v2719_v20, %s2522_s23  ;;  %4768 = vst [vmem:[#allocation83_spill] sm:$0xff] %v3322_v30 }
  0xea   : > { %874 = vrot.lane.b32.xlu0 %v2750_v48, %s2522_s23 }
  0xeb   : > { %v3324_v61 = vpop.permute.xlu1 %742 }
  0xec   : > { %4769 = vst [vmem:[#allocation84_spill] sm:$0xff] %v3324_v61  ;;  %v3330_v56 = vpop.permute.xlu0 %740 }
  0xed   : > { %890 = vrot.lane.b32.xlu1 %v2841_v39, %s2522_s23  ;;  %4770 = vst [vmem:[#allocation85_spill] sm:$0xff] %v3330_v56 }
  0xee   : > { %886 = vrot.lane.b32.xlu0 %v2820_v4, %s2522_s23 }
  0xef   : > { %v3332_v14 = vpop.permute.xlu1 %746 }
  0xf0   : > { %v3338_v20 = vpop.permute.xlu0 %744 }
  0xf1   : > { %952 = vrot.lane.b32.xlu1 %v3047_v10, %s2523_s24 }
  0xf2   : > { %920 = vrot.lane.b32.xlu0 %v2943_v24, %s2523_s24 }
  0xf3   : > { %v3340_v61 = vpop.permute.xlu1 %750 }
  0xf4   : > { %v3346_v48 = vpop.permute.xlu0 %748 }
  0xf5   : > { %924 = vrot.lane.b32.xlu1 %v2956_v50, %s2523_s24 }
  0xf6   : > { %888 = vrot.lane.b32.xlu0 %v2791_v53, %s2522_s23 }
  0xf7   : > { %v3348_v13 = vpop.permute.xlu1 %754 }
  0xf8   : > { %v3354_v10 = vpop.permute.xlu0 %752 }
  0xf9   : > { %992 = vrot.lane.b32.xlu1 %v2581_v3, %s2524_s25 }
  0xfa   : > { %956 = vrot.lane.b32.xlu0 %v3060_v19, %s2523_s24 }
  0xfb   : > { %v3356_v4 = vpop.permute.xlu1 %758 }
  0xfc   : > { %v3362_v24 = vpop.permute.xlu0 %756 }
  0xfd   : > { %892 = vrot.lane.b32.xlu1 %v2805_v2, %s2522_s23  ;;  %4771 = vst [vmem:[#allocation86_spill] sm:$0xff] %v3362_v24 }
  0xfe   : > { %1024 = vrot.lane.b32.xlu0 %v2756_v59, %s2524_s25 }
  0xff   : > { %v3364_v56 = vpop.permute.xlu1 %762 }
 0x100   : > { %v3370_v53 = vpop.permute.xlu0 %760 }
 0x101   : > { %954 = vrot.lane.b32.xlu1 %v3038_v1, %s2523_s24 }
 0x102   : > { %922 = vrot.lane.b32.xlu0 %v2936_v28, %s2523_s24  ;;  %v1212_v28 = vsel %vm1200_vm1, %v2585_v5, %v3111_v29  ;;  %v1216_v29 = vsel %vm1200_vm1, %v2598_v12, %v3128_v40  ;;  %v1214_v40 = vsel %vm1200_vm1, %v2605_v17, %v3147_v63 }
 0x103   : > { %v3372_v30 = vpop.permute.xlu1 %766 }
 0x104   : > { %4772 = vst [vmem:[#allocation87_spill] sm:$0xff] %v3372_v30  ;;  %v3378_v26 = vpop.permute.xlu0 %764 }
 0x105   : > { %1028 = vrot.lane.b32.xlu1 %v2779_v23, %s2524_s25 }
 0x106   : > { %996 = vrot.lane.b32.xlu0 %v2605_v17, %s2524_s25 }
 0x107   : > { %v3380_v24 = vpop.permute.xlu1 %778 }
 0x108   : > { %4773 = vst [vmem:[#allocation88_spill] sm:$0xff] %v3380_v24  ;;  %v3386_v1 = vpop.permute.xlu0 %776 }
 0x109   : > { %1102 = vrot.lane.b32.xlu1 %v2841_v39, %s2525_s26  ;;  %4774 = vst [vmem:[#allocation89_spill] sm:$0xff] %v3386_v1  ;;  %v1277_v39 = vsel %vm1265_vm2, %v1212_v28, %v3264_v44 }
 0x10a   : > { %1070 = vrot.lane.b32.xlu0 %v2641_v34, %s2525_s26 }
 0x10b   : > { %v3388_v30 = vpop.permute.xlu1 %782 }
 0x10c   : > { %4775 = vst [vmem:[#allocation90_spill] sm:$0xff] %v3388_v30  ;;  %v3397_v24 = vpop.permute.xlu0 %780  ;;  %v1210_v30 = vsel %vm1200_vm1, %v2581_v3, %v3139_v41  ;;  %v1279_v41 = vsel %vm1265_vm2, %v1214_v40, %v3282_v25 }
 0x10d   : > { %958 = vrot.lane.b32.xlu1 %v3051_v37, %s2523_s24  ;;  %4776 = vst [vmem:[#allocation91_spill] sm:$0xff] %v3397_v24  ;;  %v1275_v44 = vsel %vm1265_vm2, %v1210_v30, %v3273_v16  ;;  %v1281_v24 = vsel %vm1265_vm2, %v1216_v29, %v3275_v32  ;;  %v1220_v30 = vsel %vm1200_vm1, %v2617_v22, %v3141_v36 }
 0x10e   : > { %926 = vrot.lane.b32.xlu0 %v2947_v9, %s2523_s24  ;;  %v1285_v32 = vsel %vm1265_vm2, %v1220_v30, %v3284_v7  ;;  %v1218_v36 = vsel %vm1200_vm1, %v2636_v33, %v3155_v15  ;;  %v4780_v7 = vld [vmem:[#allocation58_spill] sm:$0xff]  ;;  %v2471_v30 = vld [vmem:[%s4519_s1 + $0x10] sm:$0xff]  }
 0x10f   : > { %v787_v1 = vpop.permute.xlu1 %786 }
 0x110   : > { %v3404_v34 = vsel %vm1330_vm3, %v1277_v39, %v787_v1  ;;  %v785_v28 = vpop.permute.xlu0 %784 }
 0x111   : > { %1026 = vrot.lane.b32.xlu1 %v2759_v60, %s2524_s25  ;;  %v3419_v1 = vsel %vm1330_vm3, %v1275_v44, %v785_v28  ;;  %v2470_v44 = vld [vmem:[%s4519_s1 + $0x18] sm:$0xff]  }
 0x112   : > { %994 = vrot.lane.b32.xlu0 %v2585_v5, %s2524_s25  ;;  %v2469_v5 = vld [vmem:[%s4519_s1 + $0x20] ss:$0 sps:$4 sm:$0xff]  }
 0x113   : > { %v791_v39 = vpop.permute.xlu1 %790  ;;  %2401 = vmatprep.subr.msk.bf16.mxu1 %vm1972_vm4, %v2469_v5  ;;  %v1974_v25 = vsel %vm1972_vm4, %v2469_v5, 0  ;;  %2400 = vmatprep.subr.msk.bf16.mxu0 %vm1972_vm4, %v2469_v5 }
 0x114   : > { %v3424_v3 = vsel %vm1330_vm3, %v1281_v24, %v791_v39  ;;  %v789_v16 = vpop.permute.xlu0 %788  ;;  %v1224_v24 = vsel %vm1200_vm1, %v2654_v42, %v4780_v7  ;;  %2395 = vmatpush3.bf16.msra.mxu1 %v1974_v25  ;;  %2349 = vmatpush3.bf16.msra.mxu0 %v1974_v25  ;;  %v2472_v25 = vld [vmem:[%s4519_s1 + $0x8] sm:$0xff]  }
 0x115   : > { %4777 = vst [vmem:[#allocation92_spill] sm:$0xff] %v3424_v3  ;;  %1106 = vrot.lane.b32.xlu1 %v2865_v21, %s2525_s26  ;;  %v3442_v17 = vsel %vm1330_vm3, %v1279_v41, %v789_v16  ;;  %v1289_v33 = vsel %vm1265_vm2, %v1224_v24, %v3292_v55  ;;  %2391 = vmatprep.subr.bf16.mxu1 %v2470_v44  ;;  %v4784_v55 = vld [vmem:[#allocation60_spill] sm:$0xff]  ;;  %v4792_v24 = vld [vmem:[#allocation45_spill] sm:$0xff] }
 0x116   : > { %4778 = vst [vmem:[#allocation93_spill] sm:$0xff] %v3442_v17  ;;  %1074 = vrot.lane.b32.xlu0 %v2664_v46, %s2525_s26  ;;  %v1283_v46 = vsel %vm1265_vm2, %v1218_v36, %v3290_v45  ;;  %v4783_v45 = vld [vmem:[#allocation59_spill] sm:$0xff]  ;;  %2350 = vmatprep.subr.bf16.mxu0 %v2470_v44  ;;  %v1228_v39 = vsel %vm1200_vm1, %v2679_v54, %v4784_v55  ;;  %v4857_v3 = vld [vmem:[#allocation64_spill] sm:$0xff] }
 0x117   : > { %v795_v63 = vpop.permute.xlu1 %794  ;;  %v1222_v28 = vsel %vm1200_vm1, %v2647_v38, %v4783_v45  ;;  %v1293_v38 = vsel %vm1265_vm2, %v1228_v39, %v3300_v62  ;;  %v4788_v62 = vld [vmem:[#allocation62_spill] sm:$0xff]  ;;  %v1244_v45 = vsel %vm1200_vm1, %v2759_v60, %v3197_v57  ;;  %v1248_v60 = vsel %vm1200_vm1, %v2783_v47, %v3205_v11 }
 0x118   : > { %v3447_v22 = vsel %vm1330_vm3, %v1285_v32, %v795_v63  ;;  %v793_v29 = vpop.permute.xlu0 %792  ;;  %v1287_v40 = vsel %vm1265_vm2, %v1222_v28, %v3298_v0  ;;  %2396 = vmatpush3.bf16.msra.mxu1 %v2470_v44  ;;  %2351 = vmatpush3.bf16.msra.mxu0 %v2470_v44  ;;  %v4787_v0 = vld [vmem:[#allocation61_spill] sm:$0xff]  ;;  %v1232_v32 = vsel %vm1200_vm1, %v2702_v6, %v4788_v62 }
 0x119   : > { %4779 = vst [vmem:[#allocation94_spill] sm:$0xff] %v3447_v22  ;;  %1168 = vrot.lane.b32.xlu1 %v3060_v19, %s2526_s29  ;;  %v3465_v19 = vsel %vm1330_vm3, %v1283_v46, %v793_v29  ;;  %2392 = vmatprep.subr.bf16.mxu1 %v2471_v30  ;;  %v1226_v5 = vsel %vm1200_vm1, %v2657_v43, %v4787_v0  ;;  %v4850_v22 = vld [vmem:[#allocation65_spill] sm:$0xff] }
 0x11a   : > { %4781 = vst [vmem:[#allocation58_spill] sm:$0xff] %v3465_v19  ;;  %1136 = vrot.lane.b32.xlu0 %v2956_v50, %s2526_s29  ;;  %2352 = vmatprep.subr.bf16.mxu0 %v2471_v30  ;;  %v1291_v63 = vsel %vm1265_vm2, %v1226_v5, %v3306_v58  ;;  %v1297_v43 = vsel %vm1265_vm2, %v1232_v32, %v3308_v35  ;;  %v4791_v58 = vld [vmem:[#allocation63_spill] sm:$0xff] }
 0x11b   : > { %v799_v15 = vpop.permute.xlu1 %798  ;;  %v1230_v7 = vsel %vm1200_vm1, %v2669_v49, %v4791_v58  ;;  %v4794_v49 = vld [vmem:[#allocation31_spill] sm:$0xff]  ;;  %v1309_v55 = vsel %vm1265_vm2, %v1244_v45, %v3332_v14 }
 0x11c   : > { %v3470_v42 = vsel %vm1330_vm3, %v1289_v33, %v799_v15  ;;  %v797_v50 = vpop.permute.xlu0 %796  ;;  %2397 = vmatpush3.bf16.msra.mxu1 %v2471_v30  ;;  %2353 = vmatpush3.bf16.msra.mxu0 %v2471_v30  ;;  %v1295_v35 = vsel %vm1265_vm2, %v1230_v7, %v3314_v31  ;;  %v4795_v33 = vld [vmem:[#allocation16_spill] sm:$0xff]  ;;  %v2483_v19 = vld [vmem:[%s2571_s19 + $0x8] ss:$0 sps:$4 sm:$0x11]  }
 0x11d   : > { %4782 = vst [vmem:[#allocation95_spill] sm:$0xff] %v3470_v42  ;;  %1030 = vrot.lane.b32.xlu1 %v2783_v47, %s2524_s25  ;;  %v3488_v41 = vsel %vm1330_vm3, %v1287_v40, %v797_v50  ;;  %2393 = vmatprep.subr.bf16.mxu1 %v2472_v25  ;;  %v4798_v50 = vld [vmem:[#allocation44_spill] sm:$0xff]  ;;  %v1246_v47 = vsel %vm1200_vm1, %v2779_v23, %v3211_v27  ;;  %v4803_v27 = vld [vmem:[#allocation69_spill] sm:$0xff]  ;;  %v4849_v42 = vld [vmem:[#allocation26_spill] sm:$0xff] }
 0x11e   : > { %4785 = vst [vmem:[#allocation59_spill] sm:$0xff] %v3488_v41  ;;  %998 = vrot.lane.b32.xlu0 %v2598_v12, %s2524_s25  ;;  %2354 = vmatprep.subr.bf16.mxu0 %v2472_v25  ;;  %v1311_v11 = vsel %vm1265_vm2, %v1246_v47, %v3346_v48  ;;  %v4805_v48 = vld [vmem:[#allocation70_spill] sm:$0xff]  ;;  %v2476_v47 = vld [vmem:[%s2571_s19 + $0x30] sm:$0xff]  }
 0x11f   : > { %v803_v16 = vpop.permute.xlu1 %802 }
 0x120   : > { %v3493_v54 = vsel %vm1330_vm3, %v1293_v38, %v803_v16  ;;  %v801_v12 = vpop.permute.xlu0 %800  ;;  %2398 = vmatpush3.bf16.msra.mxu1 %v2472_v25  ;;  %2355 = vmatpush3.bf16.msra.mxu0 %v2472_v25 }
 0x121   : > { %4786 = vst [vmem:[#allocation60_spill] sm:$0xff] %v3493_v54  ;;  %1104 = vrot.lane.b32.xlu1 %v2805_v2, %s2525_s26  ;;  %v3511_v2 = vsel %vm1330_vm3, %v1291_v63, %v801_v12  ;;  %v4804_v63 = vld [vmem:[#allocation13_spill] sm:$0xff] }
 0x122   : > { %4789 = vst [vmem:[#allocation61_spill] sm:$0xff] %v3511_v2  ;;  %1072 = vrot.lane.b32.xlu0 %v2592_v8, %s2525_s26  ;;  %v2473_v8 = vld [vmem:[%s4519_s1] sm:$0xff]   ;;  %v4806_v12 = vld [vmem:[#allocation17_spill] sm:$0xff] }
 0x123   : > { %v807_v36 = vpop.permute.xlu1 %806  ;;  %2394 = vmatprep.subr.bf16.mxu1 %v2473_v8  ;;  %2356 = vmatprep.subr.bf16.mxu0 %v2473_v8 }
 0x124   : > { %v3516_v6 = vsel %vm1330_vm3, %v1297_v43, %v807_v36  ;;  %v805_v46 = vpop.permute.xlu0 %804  ;;  %2399 = vmatpush3.bf16.msra.mxu1 %v2473_v8  ;;  %2357 = vmatpush3.bf16.msra.mxu0 %v2473_v8  ;;  %v4812_v8 = vld [vmem:[#allocation72_spill] sm:$0xff] }
 0x125   : > { %4790 = vst [vmem:[#allocation62_spill] sm:$0xff] %v3516_v6  ;;  %1172 = vrot.lane.b32.xlu1 %v4792_v24, %s2526_s29  ;;  %v3529_v29 = vsel %vm1330_vm3, %v1295_v35, %v805_v46  ;;  %v4810_v35 = vld [vmem:[#allocation14_spill] sm:$0xff] }
 0x126   : > { %4793 = vst [vmem:[#allocation63_spill] sm:$0xff] %v3529_v29  ;;  %1140 = vrot.lane.b32.xlu0 %v4794_v49, %s2526_s29  ;;  %v4847_v29 = vld [vmem:[#allocation37_spill] sm:$0xff] }
 0x127   : > { %v3531_v44 = vpop.permute.xlu1 %810 }
 0x128   : > { %v3537_v31 = vpop.permute.xlu0 %808 }
 0x129   : > { %1108 = vrot.lane.b32.xlu1 %v4795_v33, %s2525_s26 }
 0x12a   : > { %1076 = vrot.lane.b32.xlu0 %v2608_v18, %s2525_s26  ;;  %v4797_v18 = vld [vmem:[#allocation68_spill] sm:$0xff] }
 0x12b   : > { %v3539_v15 = vpop.permute.xlu1 %814 }
 0x12c   : > { %v3548_v28 = vpop.permute.xlu0 %812 }
 0x12d   : > { %1170 = vrot.lane.b32.xlu1 %v3051_v37, %s2526_s29  ;;  %v1242_v37 = vsel %vm1200_vm1, %v2756_v59, %v4797_v18  ;;  %v4799_v59 = vld [vmem:[#allocation30_spill] sm:$0xff] }
 0x12e   : > { %1138 = vrot.lane.b32.xlu0 %v2947_v9, %s2526_s29  ;;  %v1307_v14 = vsel %vm1265_vm2, %v1242_v37, %v3338_v20  ;;  %v1313_v9 = vsel %vm1265_vm2, %v1248_v60, %v3340_v61  ;;  %v4801_v20 = vld [vmem:[#allocation22_spill] sm:$0xff]  ;;  %v1252_v61 = vsel %vm1200_vm1, %v2809_v51, %v3213_v52  ;;  %v1250_v52 = vsel %vm1200_vm1, %v4804_v63, %v4803_v27 }
 0x12f   : > { %v819_v39 = vpop.permute.xlu1 %818  ;;  %v1317_v5 = vsel %vm1265_vm2, %v1252_v61, %v3348_v13  ;;  %v1256_v13 = vsel %vm1200_vm1, %v4806_v12, %v4805_v48  ;;  %v1315_v25 = vsel %vm1265_vm2, %v1250_v52, %v3354_v10  ;;  %v4811_v10 = vld [vmem:[#allocation33_spill] sm:$0xff]  ;;  %v4819_v61 = vld [vmem:[#allocation74_spill] sm:$0xff]  ;;  %v4823_v48 = vld [vmem:[#allocation47_spill] sm:$0xff] }
 0x130   : > { %v3555_v40 = vsel %vm1330_vm3, %v1309_v55, %v819_v39  ;;  %v817_v57 = vpop.permute.xlu0 %816  ;;  %v4814_v55 = vld [vmem:[#allocation86_spill] sm:$0xff] }
 0x131   : > { %4796 = vst [vmem:[#allocation45_spill] sm:$0xff] %v3555_v40  ;;  %1174 = vrot.lane.b32.xlu1 %v4798_v50, %s2526_s29  ;;  %v3570_v30 = vsel %vm1330_vm3, %v1307_v14, %v817_v57  ;;  %v4817_v57 = vld [vmem:[#allocation73_spill] sm:$0xff] }
 0x132   : > { %1142 = vrot.lane.b32.xlu0 %v4799_v59, %s2526_s29 }
 0x133   : > { %v823_v38 = vpop.permute.xlu1 %822 }
 0x134   : > { %v3575_v16 = vsel %vm1330_vm3, %v1313_v9, %v823_v38  ;;  %v821_v0 = vpop.permute.xlu0 %820  ;;  %v4818_v9 = vld [vmem:[#allocation18_spill] sm:$0xff] }
 0x135   : > { %4800 = vst [vmem:[#allocation31_spill] sm:$0xff] %v3575_v16  ;;  %898 = vrot.lane.b32.xlu1 %v4801_v20, %s2522_s23  ;;  %v3590_v62 = vsel %vm1330_vm3, %v1311_v11, %v821_v0  ;;  %v1258_v38 = vsel %vm1200_vm1, %v4818_v9, %v4817_v57  ;;  %v4820_v11 = vld [vmem:[#allocation24_spill] sm:$0xff]  ;;  %v4854_v16 = vld [vmem:[#allocation55_spill] sm:$0xff] }
 0x136   : > { %894 = vrot.lane.b32.xlu0 %v2865_v21, %s2522_s23  ;;  %v1321_v21 = vsel %vm1265_vm2, %v1256_v13, %v3356_v4  ;;  %v4813_v4 = vld [vmem:[#allocation20_spill] sm:$0xff]  ;;  %v1323_v0 = vsel %vm1265_vm2, %v1258_v38, %v3370_v53  ;;  %v4827_v53 = vld [vmem:[#allocation19_spill] sm:$0xff]  ;;  %v2478_v38 = vld [vmem:[%s2571_s19 + $0x38] ss:$0 sps:$4 sm:$0x11]  }
 0x137   : > { %v827_v32 = vpop.permute.xlu1 %826  ;;  %v1260_v45 = vsel %vm1200_vm1, %v4813_v4, %v4812_v8 }
 0x138   : > { %v3595_v23 = vsel %vm1330_vm3, %v1317_v5, %v827_v32  ;;  %v825_v43 = vpop.permute.xlu0 %824  ;;  %v4821_v32 = vld [vmem:[#allocation87_spill] sm:$0xff] }
 0x139   : > { %4802 = vst [vmem:[#allocation16_spill] sm:$0xff] %v3595_v23  ;;  %960 = vrot.lane.b32.xlu1 %v4792_v24, %s2523_s24  ;;  %v3610_v36 = vsel %vm1330_vm3, %v1315_v25, %v825_v43  ;;  %v4809_v24 = vld [vmem:[#allocation71_spill] sm:$0xff]  ;;  %v4826_v43 = vld [vmem:[#allocation21_spill] sm:$0xff] }
 0x13a   : > { %4807 = vst [vmem:[#allocation68_spill] sm:$0xff] %v3610_v36  ;;  %928 = vrot.lane.b32.xlu0 %v4794_v49, %s2523_s24  ;;  %v1254_v46 = vsel %vm1200_vm1, %v4810_v35, %v4809_v24  ;;  %v1325_v49 = vsel %vm1265_vm2, %v1260_v45, %v3364_v56  ;;  %v1264_v56 = vsel %vm1200_vm1, %v4820_v11, %v4819_v61  ;;  %v4825_v25 = vld [vmem:[#allocation75_spill] sm:$0xff]  ;;  %v4851_v23 = vld [vmem:[#allocation49_spill] sm:$0xff]  ;;  %v2484_v36 = vld [vmem:[%s2571_s19] sm:$0xff]  }
 0x13b   : > { %v831_v58 = vpop.permute.xlu1 %830  ;;  %v1319_v39 = vsel %vm1265_vm2, %v1254_v46, %v4814_v55 }
 0x13c   : > { %v3615_v7 = vsel %vm1330_vm3, %v1321_v21, %v831_v58  ;;  %v829_v18 = vpop.permute.xlu0 %828  ;;  %v1262_v21 = vsel %vm1200_vm1, %v4826_v43, %v4825_v25  ;;  %v4839_v25 = vld [vmem:[#allocation2_spill] sm:$0xff] }
 0x13d   : > { %4808 = vst [vmem:[#allocation44_spill] sm:$0xff] %v3615_v7  ;;  %932 = vrot.lane.b32.xlu1 %v4811_v10, %s2523_s24  ;;  %v3630_v37 = vsel %vm1330_vm3, %v1319_v39, %v829_v18  ;;  %v1327_v58 = vsel %vm1265_vm2, %v1262_v21, %v3378_v26  ;;  %v2477_v39 = vld [vmem:[%s2571_s19 + $0x3c] sm:$0xff]  }
 0x13e   : > { %4815 = vst [vmem:[#allocation30_spill] sm:$0xff] %v3630_v37  ;;  %896 = vrot.lane.b32.xlu0 %v4795_v33, %s2522_s23  ;;  %v1329_v33 = vsel %vm1265_vm2, %v1264_v56, %v4821_v32  ;;  %v4838_v56 = vld [vmem:[#allocation6_spill] sm:$0xff] }
 0x13f   : > { %v835_v60 = vpop.permute.xlu1 %834 }
 0x140   : > { %v3635_v14 = vsel %vm1330_vm3, %v1325_v49, %v835_v60  ;;  %v833_v5 = vpop.permute.xlu0 %832  ;;  %v4833_v60 = vld [vmem:[#allocation32_spill] sm:$0xff] }
 0x141   : > { %4816 = vst [vmem:[#allocation22_spill] sm:$0xff] %v3635_v14  ;;  %1000 = vrot.lane.b32.xlu1 %v2476_v47, %s2524_s25  ;;  %v3650_v27 = vsel %vm1330_vm3, %v1323_v0, %v833_v5  ;;  %v4836_v47 = vld [vmem:[#allocation25_spill] sm:$0xff] }
 0x142   : > { %4822 = vst [vmem:[#allocation69_spill] sm:$0xff] %v3650_v27  ;;  %964 = vrot.lane.b32.xlu0 %v4823_v48, %s2523_s24 }
 0x143   : > { %v839_v52 = vpop.permute.xlu1 %838 }
 0x144   : > { %v3655_v13 = vsel %vm1330_vm3, %v1329_v33, %v839_v52  ;;  %v837_v24 = vpop.permute.xlu0 %836  ;;  %v2479_v33 = vld [vmem:[%s2571_s19 + $0x44] ss:$0 sps:$4 sm:$0x11]  }
 0x145   : > { %4824 = vst [vmem:[#allocation13_spill] sm:$0xff] %v3655_v13  ;;  %900 = vrot.lane.b32.xlu1 %v4827_v53, %s2522_s23  ;;  %v3665_v46 = vsel %vm1330_vm3, %v1327_v58, %v837_v24  ;;  %v4841_v58 = vld [vmem:[#allocation35_spill] sm:$0xff]  ;;  %v4845_v13 = vld [vmem:[#allocation34_spill] sm:$0xff] }
 0x146   : > { %4828 = vst [vmem:[#allocation70_spill] sm:$0xff] %v3665_v46  ;;  %1032 = vrot.lane.b32.xlu0 %v4804_v63, %s2524_s25  ;;  %v4842_v24 = vld [vmem:[#allocation23_spill] sm:$0xff] }
 0x147   : > { %v3667_v8 = vpop.permute.xlu1 %856 }
 0x148   : > { %v3673_v4 = vpop.permute.xlu0 %854 }
 0x149   : > { %962 = vrot.lane.b32.xlu1 %v4798_v50, %s2523_s24 }
 0x14a   : > { %930 = vrot.lane.b32.xlu0 %v4799_v59, %s2523_s24  ;;  %v4830_v59 = vld [vmem:[#allocation4_spill] sm:$0xff] }
 0x14b   : > { %v3675_v45 = vpop.permute.xlu1 %860 }
 0x14c   : > { %v3681_v26 = vpop.permute.xlu0 %858 }
 0x14d   : > { %1036 = vrot.lane.b32.xlu1 %v4810_v35, %s2524_s25  ;;  %v4831_v35 = vld [vmem:[#allocation46_spill] sm:$0xff] }
 0x14e   : > { %1004 = vrot.lane.b32.xlu0 %v2477_v39, %s2524_s25 }
 0x14f   : > { %v3683_v55 = vpop.permute.xlu1 %864 }
 0x150   : > { %v3689_v50 = vpop.permute.xlu0 %862 }
 0x151   : > { %1110 = vrot.lane.b32.xlu1 %v4801_v20, %s2525_s26 }
 0x152   : > { %1078 = vrot.lane.b32.xlu0 %v4830_v59, %s2525_s26  ;;  %v4843_v59 = vld [vmem:[#allocation3_spill] sm:$0xff] }
 0x153   : > { %v3691_v63 = vpop.permute.xlu1 %868 }
 0x154   : > { %4829 = vst [vmem:[#allocation17_spill] sm:$0xff] %v3691_v63  ;;  %v3697_v18 = vpop.permute.xlu0 %866  ;;  %v4863_v63 = vld [vmem:[#allocation77_spill] sm:$0xff] }
 0x155   : > { %966 = vrot.lane.b32.xlu1 %v4831_v35, %s2523_s24 }
 0x156   : > { %934 = vrot.lane.b32.xlu0 %v4833_v60, %s2523_s24 }
 0x157   : > { %v3699_v49 = vpop.permute.xlu1 %872 }
 0x158   : > { %4832 = vst [vmem:[#allocation71_spill] sm:$0xff] %v3699_v49  ;;  %v3705_v20 = vpop.permute.xlu0 %870  ;;  %v2482_v49 = vld [vmem:[%s2571_s19 + $0x14] ss:$0 sps:$4 sm:$0x11]  }
 0x159   : > { %1034 = vrot.lane.b32.xlu1 %v2809_v51, %s2524_s25  ;;  %4834 = vst [vmem:[#allocation14_spill] sm:$0xff] %v3705_v20  ;;  %v1208_v41 = vsel %vm1200_vm1, %v2482_v49, %v4851_v23  ;;  %v4853_v20 = vld [vmem:[#allocation50_spill] sm:$0xff]  ;;  %v2485_v49 = vld [vmem:[%s2571_s19 + $0xc] sm:$0xff]  }
 0x15a   : > { %1002 = vrot.lane.b32.xlu0 %v2478_v38, %s2524_s25 }
 0x15b   : > { %v3707_v57 = vpop.permute.xlu1 %876 }
 0x15c   : > { %4835 = vst [vmem:[#allocation33_spill] sm:$0xff] %v3707_v57  ;;  %v3713_v61 = vpop.permute.xlu0 %874 }
 0x15d   : > { %1114 = vrot.lane.b32.xlu1 %v4836_v47, %s2525_s26  ;;  %4837 = vst [vmem:[#allocation72_spill] sm:$0xff] %v3713_v61  ;;  %v4852_v61 = vld [vmem:[#allocation83_spill] sm:$0xff] }
 0x15e   : > { %1082 = vrot.lane.b32.xlu0 %v4838_v56, %s2525_s26 }
 0x15f   : > { %v3715_v11 = vpop.permute.xlu1 %890 }
 0x160   : > { %v3721_v51 = vpop.permute.xlu0 %886 }
 0x161   : > { %1176 = vrot.lane.b32.xlu1 %v4823_v48, %s2526_s29 }
 0x162   : > { %1144 = vrot.lane.b32.xlu0 %v4811_v10, %s2526_s29  ;;  %v4840_v10 = vld [vmem:[#allocation51_spill] sm:$0xff] }
 0x163   : > { %v3723_v0 = vpop.permute.xlu1 %952 }
 0x164   : > { %v3729_v5 = vpop.permute.xlu0 %920 }
 0x165   : > { %1038 = vrot.lane.b32.xlu1 %v4806_v12, %s2524_s25 }
 0x166   : > { %1006 = vrot.lane.b32.xlu0 %v2479_v33, %s2524_s25  ;;  %v4844_v33 = vld [vmem:[#allocation48_spill] sm:$0xff] }
 0x167   : > { %v3731_v32 = vpop.permute.xlu1 %924 }
 0x168   : > { %v3737_v52 = vpop.permute.xlu0 %888 }
 0x169   : > { %1112 = vrot.lane.b32.xlu1 %v4827_v53, %s2525_s26 }
 0x16a   : > { %1080 = vrot.lane.b32.xlu0 %v4839_v25, %s2525_s26 }
 0x16b   : > { %v3739_v48 = vpop.permute.xlu1 %992 }
 0x16c   : > { %v3745_v12 = vpop.permute.xlu0 %956 }
 0x16d   : > { %1180 = vrot.lane.b32.xlu1 %v4840_v10, %s2526_s29 }
 0x16e   : > { %1148 = vrot.lane.b32.xlu0 %v4841_v58, %s2526_s29 }
 0x16f   : > { %v3747_v21 = vpop.permute.xlu1 %892 }
 0x170   : > { %v3753_v53 = vpop.permute.xlu0 %1024 }
 0x171   : > { %1116 = vrot.lane.b32.xlu1 %v4842_v24, %s2525_s26 }
 0x172   : > { %1084 = vrot.lane.b32.xlu0 %v4843_v59, %s2525_s26  ;;  %v4846_v59 = vld [vmem:[#allocation27_spill] sm:$0xff] }
 0x173   : > { %v3755_v39 = vpop.permute.xlu1 %954 }
 0x174   : > { %v3761_v38 = vpop.permute.xlu0 %922 }
 0x175   : > { %1178 = vrot.lane.b32.xlu1 %v4831_v35, %s2526_s29 }
 0x176   : > { %1146 = vrot.lane.b32.xlu0 %v4833_v60, %s2526_s29 }
 0x177   : > { %v3763_v56 = vpop.permute.xlu1 %1028 }
 0x178   : > { %v3769_v25 = vpop.permute.xlu0 %996 }
 0x179   : > { %1182 = vrot.lane.b32.xlu1 %v4844_v33, %s2526_s29 }
 0x17a   : > { %1150 = vrot.lane.b32.xlu0 %v4845_v13, %s2526_s29 }
 0x17b   : > { %v1103_v6 = vpop.permute.xlu1 %1102 }
 0x17c   : > { %v3775_v35 = vpop.permute.xlu0 %1070 }
 0x17d   : > { %906 = vrot.lane.b32.xlu1 %v4846_v59, %s2522_s23 }
 0x17e   : > { %902 = vrot.lane.b32.xlu0 %v4836_v47, %s2522_s23  ;;  %v2480_v47 = vld [vmem:[%s2571_s19 + $0x48] sm:$0xff]  }
 0x17f   : > { %v3777_v54 = vpop.permute.xlu1 %958 }
 0x180   : > { %v3783_v60 = vpop.permute.xlu0 %926 }
 0x181   : > { %968 = vrot.lane.b32.xlu1 %v4840_v10, %s2523_s24 }
 0x182   : > { %936 = vrot.lane.b32.xlu0 %v4841_v58, %s2523_s24  ;;  %v4848_v58 = vld [vmem:[#allocation53_spill] sm:$0xff] }
 0x183   : > { %v3785_v14 = vpop.permute.xlu1 %1026 }
 0x184   : > { %v3791_v46 = vpop.permute.xlu0 %994 }
 0x185   : > { %940 = vrot.lane.b32.xlu1 %v4847_v29, %s2523_s24 }
 0x186   : > { %904 = vrot.lane.b32.xlu0 %v4842_v24, %s2522_s23  ;;  %v3810_v24 = vld [vmem:[%s2571_s19 + $0x60] sm:$0xff]  }
 0x187   : > { %v3793_v2 = vpop.permute.xlu1 %1106 }
 0x188   : > { %v3799_v10 = vpop.permute.xlu0 %1074 }
 0x189   : > { %1008 = vrot.lane.b32.xlu1 %v2480_v47, %s2524_s25  ;;  %v1234_v47 = vsel %vm1200_vm1, %v3810_v24, %v4850_v22  ;;  %v1204_v22 = vsel %vm1200_vm1, %v2483_v19, %v4853_v20 }
 0x18a   : > { %972 = vrot.lane.b32.xlu0 %v4848_v58, %s2523_s24  ;;  %v1299_v37 = vsel %vm1265_vm2, %v1234_v47, %v4852_v61  ;;  %v4855_v61 = vld [vmem:[#allocation57_spill] sm:$0xff] }
 0x18b   : > { %v1169_v27 = vpop.permute.xlu1 %1168  ;;  %v1364_v40 = vsel %vm1330_vm3, %v1299_v37, %v3537_v31  ;;  %v1206_v47 = vsel %vm1200_vm1, %v2485_v49, %v4855_v61  ;;  %v3846_v31 = vld [vmem:[%s2571_s19 + $0x74] ss:$0 sps:$4 sm:$0x11]   ;;  %v4859_v37 = vld [vmem:[#allocation66_spill] sm:$0xff]  ;;  %v4861_v61 = vld [vmem:[#allocation67_spill] sm:$0xff] }
 0x18c   : > { %v3805_v57 = vpop.permute.xlu0 %1136  ;;  %4858 = vst [vmem:[#allocation86_spill] sm:$0xff] %v3846_v31  ;;  %v1240_v20 = vsel %vm1200_vm1, %v3846_v31, %v4859_v37  ;;  %v4865_v31 = vld [vmem:[#allocation85_spill] sm:$0xff] }
 0x18d   : > { %908 = vrot.lane.b32.xlu1 %v4849_v42, %s2522_s23 }
 0x18e   : > { %1040 = vrot.lane.b32.xlu0 %v4818_v9, %s2524_s25  ;;  %v1202_v9 = vsel %vm1200_vm1, %v2484_v36, %v4854_v16  ;;  %v1429_v16 = vsel %vm1395_vm6, %v1364_v40, %v3721_v51  ;;  %v4862_v51 = vld [vmem:[#allocation76_spill] sm:$0xff] }
 0x18f   : > { %v3807_v7 = vpop.permute.xlu1 %1030  ;;  %v1494_v49 = vsel %vm1460_vm5, %v1429_v16, %v3723_v0  ;;  %v1267_v37 = vsel %vm1265_vm2, %v1202_v9, %v4863_v63  ;;  %v4867_v63 = vld [vmem:[#allocation80_spill] sm:$0xff] }
 0x190   : > { %v3832_v23 = vpop.permute.xlu0 %998  ;;  %v1559_v0 = vsel %vm1525_vm8, %v1494_v49, %v3753_v53  ;;  %v1271_v9 = vsel %vm1265_vm2, %v1206_v47, %v4867_v63 }
 0x191   : > { %970 = vrot.lane.b32.xlu1 %v4844_v33, %s2523_s24  ;;  %v3838_v33 = vld [vmem:[%s2571_s19 + $0x68] ss:$0 sps:$4 sm:$0x11]  }
 0x192   : > { %4856 = vst [vmem:[#allocation20_spill] sm:$0xff] %v3838_v33  ;;  %v1236_v19 = vsel %vm1200_vm1, %v3838_v33, %v4857_v3  ;;  %938 = vrot.lane.b32.xlu0 %v4845_v13, %s2523_s24  ;;  %v3856_v3 = vld [vmem:[%s2571_s19 + $0x6c] sm:$0xff]   ;;  %v1269_v33 = vsel %vm1265_vm2, %v1204_v22, %v4862_v51  ;;  %v4864_v13 = vld [vmem:[#allocation78_spill] sm:$0xff]  ;;  %v1624_v22 = vsel %vm1590_vm7, %v1559_v0, %v1103_v6  ;;  %v2489_v0 = vld [vmem:[%s2571_s19 + $0x54] sm:$0xff]  }
 0x193   : > { %v1105_v36 = vpop.permute.xlu1 %1104  ;;  %4860 = vst [vmem:[#allocation73_spill] sm:$0xff] %v3856_v3  ;;  %v1238_v40 = vsel %vm1200_vm1, %v3856_v3, %v4861_v61  ;;  %v1273_v16 = vsel %vm1265_vm2, %v1208_v41, %v4864_v13  ;;  %v4866_v61 = vld [vmem:[#allocation89_spill] sm:$0xff]  ;;  %v1689_v41 = vsel %vm1655_vm9, %v1624_v22, %v1169_v27  ;;  %v4868_v13 = vld [vmem:[#allocation82_spill] sm:$0xff] }
 0x194   : > { %v1303_v17 = vsel %vm1265_vm2, %v1238_v40, %v4865_v31  ;;  %v1332_v3 = vsel %vm1330_vm3, %v1267_v37, %v4866_v61  ;;  %v1073_v51 = vpop.permute.xlu0 %1072  ;;  %v1301_v31 = vsel %vm1265_vm2, %v1236_v19, %v4868_v13  ;;  %v4869_v40 = vld [vmem:[#allocation84_spill] sm:$0xff]  ;;  %v4871_v27 = vld [vmem:[#allocation90_spill] sm:$0xff]  ;;  %v1802_v61 = vshll.u32 %v1689_v41, 16 }
 0x195   : > { %1044 = vrot.lane.b32.xlu1 %v4826_v43, %s2524_s25  ;;  %v1368_v53 = vsel %vm1330_vm3, %v1303_v17, %v3548_v28  ;;  %v1397_v43 = vsel %vm1395_vm6, %v1332_v3, %v3673_v4  ;;  %v1305_v37 = vsel %vm1265_vm2, %v1240_v20, %v4869_v40  ;;  %v4870_v17 = vld [vmem:[#allocation88_spill] sm:$0xff]  ;;  %v1338_v4 = vsel %vm1330_vm3, %v1273_v16, %v4871_v27 }
 0x196   : > { %v1433_v6 = vsel %vm1395_vm6, %v1368_v53, %v3715_v11  ;;  %v1462_v47 = vsel %vm1460_vm5, %v1397_v43, %v3729_v5  ;;  %1012 = vrot.lane.b32.xlu0 %v2489_v0, %s2524_s25  ;;  %v1334_v28 = vsel %vm1330_vm3, %v1269_v33, %v4870_v17  ;;  %v4872_v11 = vld [vmem:[#allocation91_spill] sm:$0xff] }
 0x197   : > { %v1173_v49 = vpop.permute.xlu1 %1172  ;;  %v1527_v19 = vsel %vm1525_vm8, %v1462_v47, %v3739_v48  ;;  %v1498_v20 = vsel %vm1460_vm5, %v1433_v6, %v3745_v12  ;;  %v1336_v5 = vsel %vm1330_vm3, %v1271_v9, %v4872_v11  ;;  %v1366_v48 = vsel %vm1330_vm3, %v1301_v31, %v3531_v44  ;;  %v4873_v44 = vld [vmem:[#allocation8_spill] sm:$0xff] }
 0x198   : > { %v1563_v3 = vsel %vm1525_vm8, %v1498_v20, %v3763_v56  ;;  %v1592_v33 = vsel %vm1590_vm7, %v1527_v19, %v3775_v35  ;;  %v1141_v16 = vpop.permute.xlu0 %1140  ;;  %v1401_v12 = vsel %vm1395_vm6, %v1336_v5, %v3681_v26  ;;  %v1431_v35 = vsel %vm1395_vm6, %v1366_v48, %v3737_v52  ;;  %v4874_v52 = vld [vmem:[#allocation52_spill] sm:$0xff] }
 0x199   : > { %1118 = vrot.lane.b32.xlu1 %v4846_v59, %s2525_s26  ;;  %v1628_v59 = vsel %vm1590_vm7, %v1563_v3, %v3793_v2  ;;  %v1657_v22 = vsel %vm1655_vm9, %v1592_v33, %v3805_v57  ;;  %v1466_v56 = vsel %vm1460_vm5, %v1401_v12, %v3731_v32  ;;  %v1370_v26 = vsel %vm1330_vm3, %v1305_v37, %v3539_v15  ;;  %v4875_v6 = vld [vmem:[#allocation36_spill] sm:$0xff]  ;;  %v4876_v12 = vld [vmem:[#allocation29_spill] sm:$0xff] }
 0x19a   : > { %v1693_v9 = vsel %vm1655_vm9, %v1628_v59, %v1173_v49  ;;  %1086 = vrot.lane.b32.xlu0 %v4873_v44, %s2525_s26  ;;  %v1399_v2 = vsel %vm1395_vm6, %v1334_v28, %v3667_v8  ;;  %v1496_v57 = vsel %vm1460_vm5, %v1431_v35, %v3755_v39  ;;  %v1531_v32 = vsel %vm1525_vm8, %v1466_v56, %v3769_v25  ;;  %v2491_v33 = vld [vmem:[%s2571_s19 + $0x50] ss:$0 sps:$4 sm:$0x11]  }
 0x19b   : > { %v1109_v63 = vpop.permute.xlu1 %1108  ;;  %v1561_v53 = vsel %vm1525_vm8, %v1496_v57, %v3785_v14  ;;  %v1596_v43 = vsel %vm1590_vm7, %v1531_v32, %v3799_v10  ;;  %v1804_v49 = vrot.slane %v1802_v61, 1  ;;  %v1722_v15 = vshll.u32 %v1657_v22, 16  ;;  %v4877_v32 = vld [vmem:[#allocation10_spill] sm:$0xff] }
 0x19c   : > { %v1077_v13 = vpop.permute.xlu0 %1076  ;;  %v1435_v8 = vsel %vm1395_vm6, %v1370_v26, %v3747_v21  ;;  %v1626_v39 = vsel %vm1590_vm7, %v1561_v53, %v1105_v36  ;;  %v1812_v31 = vshll.u32 %v1693_v9, 16  ;;  %v1661_v25 = vsel %vm1655_vm9, %v1596_v43, %v1141_v16 }
 0x19d   : > { %974 = vrot.lane.b32.xlu1 %v4874_v52, %s2523_s24  ;;  %v1464_v37 = vsel %vm1460_vm5, %v1399_v2, %v3761_v38  ;;  %v1500_v14 = vsel %vm1460_vm5, %v1435_v8, %v3777_v54  ;;  %v1800_v10 = vshrl.u32 %v1689_v41, 16  ;;  %v1403_v21 = vsel %vm1395_vm6, %v1338_v4, %v3675_v45  ;;  %v2490_v38 = vld [vmem:[%s2571_s19 + $0xb0] ss:$0 sps:$4 sm:$0x11]  }
 0x19e   : > { %942 = vrot.lane.b32.xlu0 %v4875_v6, %s2523_s24  ;;  %v1529_v36 = vsel %vm1525_vm8, %v1464_v37, %v3791_v46  ;;  %v1565_v0 = vsel %vm1525_vm8, %v1500_v14, %v3807_v7  ;;  %v1724_v41 = vrot.slane %v1722_v15, 1  ;;  %v1732_v27 = vshll.u32 %v1661_v25, 16  ;;  %v4878_v14 = vld [vmem:[#allocation5_spill] sm:$0xff] }
 0x19f   : > { %v1171_v40 = vpop.permute.xlu1 %1170  ;;  %v1805_v54 = vor.u32 %v1804_v49, %v1800_v10  ;;  %v1594_v28 = vsel %vm1590_vm7, %v1529_v36, %v1073_v51  ;;  %v1814_v20 = vrot.slane %v1812_v31, 1  ;;  %v1630_v45 = vsel %vm1590_vm7, %v1565_v0, %v1109_v63  ;;  %v2492_v31 = vld [vmem:[%s2571_s19 + $0xbc] ss:$0 sps:$4 sm:$0x11]   ;;  %v4879_v10 = vld [vmem:[#allocation56_spill] sm:$0xff]  ;;  %v4880_v36 = vld [vmem:[#allocation39_spill] sm:$0xff] }
 0x1a0   : > { %v1691_v47 = vsel %vm1655_vm9, %v1626_v39, %v1171_v40  ;;  %v1139_v19 = vpop.permute.xlu0 %1138  ;;  %v1468_v7 = vsel %vm1460_vm5, %v1403_v21, %v3783_v60  ;;  %v1720_v5 = vshrl.u32 %v1657_v22, 16  ;;  %v1810_v16 = vshrl.u32 %v1693_v9, 16  ;;  %v2493_v40 = vld [vmem:[%s2571_s19 + $0x5c] ss:$0 sps:$4 sm:$0x11]   ;;  %v4881_v0 = vld [vmem:[#allocation28_spill] sm:$0xff] }
 0x1a1   : > { %v1806_v17 = vshll.u32 %v1691_v47, 16  ;;  %1042 = vrot.lane.b32.xlu1 %v2490_v38, %s2524_s25  ;;  %v1659_v46 = vsel %vm1655_vm9, %v1594_v28, %v1139_v19  ;;  %v1533_v51 = vsel %vm1525_vm8, %v1468_v7, %v3832_v23  ;;  %v1734_v56 = vrot.slane %v1732_v27, 1 }
 0x1a2   : > { %v1726_v3 = vshll.u32 %v1659_v46, 16  ;;  %1010 = vrot.lane.b32.xlu0 %v2491_v33, %s2524_s25  ;;  %v1725_v63 = vor.u32 %v1724_v41, %v1720_v5  ;;  %v1598_v60 = vsel %vm1590_vm7, %v1533_v51, %v1077_v13  ;;  %v1815_v44 = vor.u32 %v1814_v20, %v1810_v16  ;;  %v4883_v41 = vld [vmem:[#allocation7_spill] sm:$0xff]  ;;  %v4885_v46 = vld [vmem:[#allocation54_spill] sm:$0xff] }
 0x1a3   : > { %v1808_v4 = vrot.slane %v1806_v17, 1  ;;  %v1175_v11 = vpop.permute.xlu1 %1174  ;;  %v1730_v9 = vshrl.u32 %v1661_v25, 16  ;;  %v4882_v17 = vld [vmem:[#allocation81_spill] sm:$0xff]  ;;  %v4884_v20 = vld [vmem:[#allocation79_spill] sm:$0xff] }
 0x1a4   : > { %v1695_v61 = vsel %vm1655_vm9, %v1630_v45, %v1175_v11  ;;  %v1728_v22 = vrot.slane %v1726_v3, 1  ;;  %v1143_v35 = vpop.permute.xlu0 %1142  ;;  %v843_v38 = vshll.u32 %v4882_v17, 16  ;;  %v841_v27 = vshrl.u32 %v4882_v17, 16 }
 0x1a5   : > { %v1816_v48 = vshll.u32 %v1695_v61, 16  ;;  %1122 = vrot.lane.b32.xlu1 %v4876_v12, %s2525_s26  ;;  %v1809_v59 = vsel %vm383_vm0, %v1805_v54, %v1808_v4  ;;  %v1663_v2 = vsel %vm1655_vm9, %v1598_v60, %v1143_v35  ;;  %v1735_v49 = vor.u32 %v1734_v56, %v1730_v9 }
 0x1a6   : > { %2374 = vmatprep.mubr.msk.bf16.mxu1 %vm1923_vm10, %v1809_v59  ;;  %v1736_v57 = vshll.u32 %v1663_v2, 16  ;;  %1090 = vrot.lane.b32.xlu0 %v4877_v32, %s2525_s26  ;;  %v1729_v53 = vsel %vm383_vm0, %v1725_v63, %v1728_v22  ;;  %v845_v19 = vrot.slane %v843_v38, 1  ;;  %v848_v45 = vshll.u32 %v4884_v20, 16 }
 0x1a7   : > { %v1818_v26 = vrot.slane %v1816_v48, 1  ;;  %v3973_v23 = vpop.permute.xlu1 %898  ;;  %2358 = vmatprep.mubr.msk.bf16.mxu0 %vm1923_vm10, %v1729_v53  ;;  %v4887_v48 = vld [vmem:[#allocation11_spill] sm:$0xff]  ;;  %v852_v2 = vshrl.u32 %v4884_v20, 16 }
 0x1a8   : > { %v1738_v15 = vrot.slane %v1736_v57, 1  ;;  %v3982_v13 = vpop.permute.xlu0 %894  ;;  %v846_v7 = vor.u32 %v845_v19, %v841_v27  ;;  %v850_v5 = vrot.slane %v848_v45, 1  ;;  %v4081_v53 = vld [vmem:[%s2571_s19 + $0xcc] sm:$0xff]   ;;  %v4891_v19 = vld [vmem:[#allocation17_spill] sm:$0xff] }
 0x1a9   : > { %1184 = vrot.lane.b32.xlu1 %v4848_v58, %s2526_s29  ;;  %v1819_v43 = vsel %vm383_vm0, %v1815_v44, %v1818_v26  ;;  %v4888_v26 = vld [vmem:[#allocation41_spill] sm:$0xff]  ;;  %v1437_v57 = vsel %vm1395_vm6, %v3570_v30, %v3982_v13  ;;  %v4892_v45 = vld [vmem:[#allocation92_spill] sm:$0xff] }
 0x1aa   : > { %2375 = vmatmul.mubr.msk.bf16.vlgmr.msra.gmra.mxu1 %vm1923_vm10, %v1819_v43  ;;  %1152 = vrot.lane.b32.xlu0 %v4847_v29, %s2526_s29  ;;  %v1739_v39 = vsel %vm383_vm0, %v1735_v49, %v1738_v15  ;;  %v4039_v61 = vsel %vm383_vm0, %v846_v7, %v850_v5  ;;  %v1059_v15 = vshll.u32 %v4081_v53, 16  ;;  %v4893_v7 = vld [vmem:[#allocation45_spill] sm:$0xff] }
 0x1ab   : > { %v3985_v8 = vpop.permute.xlu1 %960  ;;  %2359 = vmatmul.mubr.msk.bf16.vlgmr.msra.gmra.mxu0 %vm1923_vm10, %v1739_v39  ;;  %v1405_v39 = vsel %vm1395_vm6, %v3419_v1, %v3689_v50  ;;  %v4111_v1 = vld [vmem:[%s2571_s19 + $0xd4] ss:$0 sps:$4 sm:$0x11]   ;;  %v1057_v50 = vshrl.u32 %v4081_v53, 16 }
 0x1ac   : > { %v3993_v58 = vpop.permute.xlu0 %928  ;;  %v1502_v43 = vsel %vm1460_vm5, %v1437_v57, %v3985_v8 }
 0x1ad   : > { %1046 = vrot.lane.b32.xlu1 %v2492_v31, %s2524_s25 }
 0x1ae   : > { %1014 = vrot.lane.b32.xlu0 %v2493_v40, %s2524_s25  ;;  %v1470_v40 = vsel %vm1460_vm5, %v1405_v39, %v3993_v58  ;;  %v4895_v39 = vld [vmem:[#allocation73_spill] sm:$0xff] }
 0x1af   : > { %v3995_v25 = vpop.permute.xlu1 %932 }
 0x1b0   : > { %v4001_v37 = vpop.permute.xlu0 %896 }
 0x1b1   : > { %1120 = vrot.lane.b32.xlu1 %v4849_v42, %s2525_s26 }
 0x1b2   : > { %1088 = vrot.lane.b32.xlu0 %v4878_v14, %s2525_s26  ;;  %v4889_v14 = vld [vmem:[#allocation9_spill] sm:$0xff] }
 0x1b3   : > { %v4003_v29 = vpop.permute.xlu1 %1000 }
 0x1b4   : > { %v4009_v47 = vpop.permute.xlu0 %964 }
 0x1b5   : > { %1188 = vrot.lane.b32.xlu1 %v4879_v10, %s2526_s29 }
 0x1b6   : > { %1156 = vrot.lane.b32.xlu0 %v4880_v36, %s2526_s29 }
 0x1b7   : > { %v4011_v21 = vpop.permute.xlu1 %900 }
 0x1b8   : > { %v1033_v42 = vpop.permute.xlu0 %1032 }
 0x1b9   : > { %1124 = vrot.lane.b32.xlu1 %v4881_v0, %s2525_s26  ;;  %v1567_v49 = vsel %vm1525_vm8, %v1502_v43, %v1033_v42 }
 0x1ba   : > { %1092 = vrot.lane.b32.xlu0 %v4883_v41, %s2525_s26 }
 0x1bb   : > { %v4018_v54 = vpop.permute.xlu1 %962 }
 0x1bc   : > { %v4024_v28 = vpop.permute.xlu0 %930 }
 0x1bd   : > { %1186 = vrot.lane.b32.xlu1 %v4874_v52, %s2526_s29  ;;  %v4886_v52 = vld [vmem:[#allocation38_spill] sm:$0xff] }
 0x1be   : > { %1154 = vrot.lane.b32.xlu0 %v4875_v6, %s2526_s29 }
 0x1bf   : > { %v1037_v4 = vpop.permute.xlu1 %1036 }
 0x1c0   : > { %v4032_v11 = vpop.permute.xlu0 %1004 }
 0x1c1   : > { %1190 = vrot.lane.b32.xlu1 %v4885_v46, %s2526_s29 }
 0x1c2   : > { %1158 = vrot.lane.b32.xlu0 %v4886_v52, %s2526_s29 }
 0x1c3   : > { %v1111_v3 = vpop.permute.xlu1 %1110 }
 0x1c4   : > { %v1079_v33 = vpop.permute.xlu0 %1078  ;;  %v1632_v30 = vsel %vm1590_vm7, %v1567_v49, %v1111_v3 }
 0x1c5   : > { %910 = vrot.lane.b32.xlu1 %v4876_v12, %s2522_s23  ;;  %v4053_v12 = vrot.slane %v841_v27, 7 }
 0x1c6   : > { %878 = vrot.lane.b32.xlu0 %v4877_v32, %s2522_s23 }
 0x1c7   : > { %v4041_v51 = vpop.permute.xlu1 %966  ;;  %v4062_v56 = vor.u32 %v4053_v12, %v843_v38 }
 0x1c8   : > { %v4047_v6 = vpop.permute.xlu0 %934 }
 0x1c9   : > { %914 = vrot.lane.b32.xlu1 %v4039_v61, %s2522_s23 }
 0x1ca   : > { %882 = vrot.lane.b32.xlu0 %v4887_v48, %s2522_s23 }
 0x1cb   : > { %v1035_v16 = vpop.permute.xlu1 %1034 }
 0x1cc   : > { %v4055_v59 = vpop.permute.xlu0 %1002 }
 0x1cd   : > { %976 = vrot.lane.b32.xlu1 %v4879_v10, %s2523_s24  ;;  %v1535_v10 = vsel %vm1525_vm8, %v1470_v40, %v4003_v29  ;;  %v1407_v29 = vsel %vm1395_vm6, %v3404_v34, %v3683_v55  ;;  %v1439_v34 = vsel %vm1395_vm6, %v4893_v7, %v4001_v37  ;;  %v1064_v37 = vshll.u32 %v4111_v1, 16 }
 0x1ce   : > { %944 = vrot.lane.b32.xlu0 %v4880_v36, %s2523_s24  ;;  %v1600_v58 = vsel %vm1590_vm7, %v1535_v10, %v1079_v33 }
 0x1cf   : > { %v1115_v63 = vpop.permute.xlu1 %1114 }
 0x1d0   : > { %v1083_v60 = vpop.permute.xlu0 %1082 }
 0x1d1   : > { %912 = vrot.lane.b32.xlu1 %v4881_v0, %s2522_s23 }
 0x1d2   : > { %880 = vrot.lane.b32.xlu0 %v4883_v41, %s2522_s23 }
 0x1d3   : > { %v1177_v22 = vpop.permute.xlu1 %1176 }
 0x1d4   : > { %v1145_v35 = vpop.permute.xlu0 %1144  ;;  %v1697_v8 = vsel %vm1655_vm9, %v1632_v30, %v1177_v22  ;;  %v1472_v30 = vsel %vm1460_vm5, %v1407_v29, %v4024_v28  ;;  %v1066_v28 = vrot.slane %v1064_v37, 1 }
 0x1d5   : > { %980 = vrot.lane.b32.xlu1 %v4062_v56, %s2523_s24  ;;  %v1822_v0 = vshll.u32 %v1697_v8, 16  ;;  %v1665_v41 = vsel %vm1655_vm9, %v1600_v58, %v1145_v35 }
 0x1d6   : > { %948 = vrot.lane.b32.xlu0 %v4888_v26, %s2523_s24 }
 0x1d7   : > { %v4068_v44 = vpop.permute.xlu1 %1038 }
 0x1d8   : > { %v4075_v9 = vpop.permute.xlu0 %1006 }
 0x1d9   : > { %1048 = vrot.lane.b32.xlu1 %v4882_v17, %s2524_s25 }
 0x1da   : > { %1016 = vrot.lane.b32.xlu0 %v3810_v24, %s2524_s25  ;;  %v1441_v24 = vsel %vm1395_vm6, %v3590_v62, %v3973_v23  ;;  %v1061_v62 = vrot.slane %v1059_v15, 1 }
 0x1db   : > { %v1113_v32 = vpop.permute.xlu1 %1112  ;;  %v1506_v36 = vsel %vm1460_vm5, %v1441_v24, %v4009_v47  ;;  %v4890_v47 = vld [vmem:[#allocation93_spill] sm:$0xff] }
 0x1dc   : > { %v1081_v13 = vpop.permute.xlu0 %1080  ;;  %v1571_v23 = vsel %vm1525_vm8, %v1506_v36, %v1037_v4  ;;  %v1409_v17 = vsel %vm1395_vm6, %v4890_v47, %v3697_v18  ;;  %v1411_v4 = vsel %vm1395_vm6, %v4892_v45, %v4891_v19  ;;  %v1504_v18 = vsel %vm1460_vm5, %v1439_v34, %v4018_v54  ;;  %v4894_v54 = vld [vmem:[#allocation31_spill] sm:$0xff] }
 0x1dd   : > { %916 = vrot.lane.b32.xlu1 %v852_v2, %s2522_s23  ;;  %v1636_v38 = vsel %vm1590_vm7, %v1571_v23, %v1115_v63  ;;  %v1569_v3 = vsel %vm1525_vm8, %v1504_v18, %v1035_v16  ;;  %v1742_v63 = vshll.u32 %v1665_v41, 16 }
 0x1de   : > { %884 = vrot.lane.b32.xlu0 %v4889_v14, %s2522_s23  ;;  %v1634_v35 = vsel %vm1590_vm7, %v1569_v3, %v1113_v32 }
 0x1df   : > { %v1181_v31 = vpop.permute.xlu1 %1180  ;;  %v1744_v10 = vrot.slane %v1742_v63, 1 }
 0x1e0   : > { %v1149_v42 = vpop.permute.xlu0 %1148  ;;  %v1701_v55 = vsel %vm1655_vm9, %v1636_v38, %v1181_v31 }
 0x1e1   : > { %978 = vrot.lane.b32.xlu1 %v4885_v46, %s2523_s24  ;;  %v1474_v46 = vsel %vm1460_vm5, %v1409_v17, %v3995_v25  ;;  %v4145_v25 = vor.u32 %v1061_v62, %v1057_v50  ;;  %v1832_v57 = vshll.u32 %v1701_v55, 16  ;;  %v1830_v47 = vshrl.u32 %v1701_v55, 16  ;;  %v4896_v55 = vld [vmem:[#allocation40_spill] sm:$0xff] }
 0x1e2   : > { %946 = vrot.lane.b32.xlu0 %v4886_v52, %s2523_s24  ;;  %v1539_v5 = vsel %vm1525_vm8, %v1474_v46, %v4032_v11  ;;  %v1824_v52 = vrot.slane %v1822_v0, 1  ;;  %v1443_v11 = vsel %vm1395_vm6, %v4894_v54, %v4011_v21  ;;  %v1537_v21 = vsel %vm1525_vm8, %v1472_v30, %v4055_v59  ;;  %v4897_v54 = vld [vmem:[#allocation20_spill] sm:$0xff] }
 0x1e3   : > { %v1117_v27 = vpop.permute.xlu1 %1116  ;;  %v1604_v33 = vsel %vm1590_vm7, %v1539_v5, %v1083_v60  ;;  %v1508_v16 = vsel %vm1460_vm5, %v1443_v11, %v4041_v51  ;;  %v1820_v60 = vshrl.u32 %v1697_v8, 16  ;;  %v1602_v51 = vsel %vm1590_vm7, %v1537_v21, %v1081_v13  ;;  %v2494_v5 = vld [vmem:[%s2571_s19 + $0xc8] ss:$0 sps:$4 sm:$0x11]  }
 0x1e4   : > { %v1085_v22 = vpop.permute.xlu0 %1084  ;;  %v1669_v43 = vsel %vm1655_vm9, %v1604_v33, %v1149_v42  ;;  %v1573_v32 = vsel %vm1525_vm8, %v1508_v16, %v4068_v44  ;;  %v1834_v62 = vrot.slane %v1832_v57, 1  ;;  %v1476_v44 = vsel %vm1460_vm5, %v1411_v4, %v4047_v6 }
 0x1e5   : > { %1052 = vrot.lane.b32.xlu1 %v4081_v53, %s2524_s25  ;;  %v1825_v40 = vor.u32 %v1824_v52, %v1820_v60  ;;  %v1752_v8 = vshll.u32 %v1669_v43, 16  ;;  %v1638_v23 = vsel %vm1590_vm7, %v1573_v32, %v1117_v27  ;;  %v1740_v42 = vshrl.u32 %v1665_v41, 16  ;;  %v4901_v53 = vld [vmem:[#allocation12_spill] sm:$0xff] }
 0x1e6   : > { %1020 = vrot.lane.b32.xlu0 %v4895_v39, %s2524_s25  ;;  %v1541_v13 = vsel %vm1525_vm8, %v1476_v44, %v4075_v9  ;;  %v1750_v7 = vshrl.u32 %v1669_v43, 16  ;;  %v1067_v63 = vsel %vm383_vm0, %v4145_v25, %v1066_v28  ;;  %v4898_v43 = vld [vmem:[#allocation15_spill] sm:$0xff]  ;;  %v1134_v30 = vrot.slane %v1057_v50, 7  ;;  %v4899_v39 = vld [vmem:[#allocation86_spill] sm:$0xff] }
 0x1e7   : > { %v1179_v49 = vpop.permute.xlu1 %1178  ;;  %v1745_v27 = vor.u32 %v1744_v10, %v1740_v42  ;;  %v1754_v6 = vrot.slane %v1752_v8, 1  ;;  %v1606_v41 = vsel %vm1590_vm7, %v1541_v13, %v1085_v22  ;;  %v1068_v50 = vshrl.u32 %v4111_v1, 16  ;;  %v4904_v13 = vld [vmem:[#allocation14_spill] sm:$0xff] }
 0x1e8   : > { %v1699_v31 = vsel %vm1655_vm9, %v1634_v35, %v1179_v49  ;;  %v1147_v36 = vpop.permute.xlu0 %1146 }
 0x1e9   : > { %v1826_v24 = vshll.u32 %v1699_v31, 16  ;;  %1126 = vrot.lane.b32.xlu1 %v4039_v61, %s2525_s26  ;;  %v1667_v59 = vsel %vm1655_vm9, %v1602_v51, %v1147_v36  ;;  %v1755_v3 = vor.u32 %v1754_v6, %v1750_v7  ;;  %v4906_v6 = vld [vmem:[#allocation30_spill] sm:$0xff] }
 0x1ea   : > { %v1746_v29 = vshll.u32 %v1667_v59, 16  ;;  %1094 = vrot.lane.b32.xlu0 %v4887_v48, %s2525_s26  ;;  %v1835_v48 = vor.u32 %v1834_v62, %v1830_v47  ;;  %v4905_v47 = vld [vmem:[#allocation58_spill] sm:$0xff] }
 0x1eb   : > { %v1828_v58 = vrot.slane %v1826_v24, 1  ;;  %v1183_v0 = vpop.permute.xlu1 %1182  ;;  %v4900_v24 = vld [vmem:[#allocation43_spill] sm:$0xff] }
 0x1ec   : > { %v1703_v61 = vsel %vm1655_vm9, %v1638_v23, %v1183_v0  ;;  %v1748_v19 = vrot.slane %v1746_v29, 1  ;;  %v1151_v45 = vpop.permute.xlu0 %1150 }
 0x1ed   : > { %v1836_v17 = vshll.u32 %v1703_v61, 16  ;;  %982 = vrot.lane.b32.xlu1 %v4053_v12, %s2523_s24  ;;  %v1829_v38 = vsel %vm383_vm0, %v1825_v40, %v1828_v58  ;;  %v1671_v9 = vsel %vm1655_vm9, %v1606_v41, %v1151_v45  ;;  %v4902_v40 = vld [vmem:[#allocation42_spill] sm:$0xff]  ;;  %v4903_v58 = vld [vmem:[#allocation68_spill] sm:$0xff] }
 0x1ee   : > { %2378 = vmatprep.mubr.msk.bf16.mxu1 %vm1923_vm10, %v1829_v38  ;;  %v1756_v34 = vshll.u32 %v1671_v9, 16  ;;  %950 = vrot.lane.b32.xlu0 %v4896_v55, %s2523_s24  ;;  %v1749_v18 = vsel %vm383_vm0, %v1745_v27, %v1748_v19 }
 0x1ef   : > { %v1838_v4 = vrot.slane %v1836_v17, 1  ;;  %v4184_v46 = vpop.permute.xlu1 %906  ;;  %2362 = vmatprep.mubr.msk.bf16.mxu0 %vm1923_vm10, %v1749_v18  ;;  %v1413_v17 = vsel %vm1395_vm6, %v4905_v47, %v4904_v13  ;;  %v4908_v18 = vld [vmem:[#allocation59_spill] sm:$0xff] }
 0x1f0   : > { %v1758_v33 = vrot.slane %v1756_v34, 1  ;;  %v903_v52 = vpop.permute.xlu0 %902  ;;  %v1449_v41 = vsel %vm1395_vm6, %v4906_v6, %v4184_v46 }
 0x1f1   : > { %1050 = vrot.lane.b32.xlu1 %v2494_v5, %s2524_s25  ;;  %v1839_v37 = vsel %vm383_vm0, %v1835_v48, %v1838_v4  ;;  %v1445_v59 = vsel %vm1395_vm6, %v4903_v58, %v903_v52  ;;  %v4909_v52 = vld [vmem:[#allocation16_spill] sm:$0xff] }
 0x1f2   : > { %2379 = vmatmul.mubr.msk.bf16.gmra.mxu1 %vm1923_vm10, %v1839_v37  ;;  %1018 = vrot.lane.b32.xlu0 %v4897_v54, %s2524_s25  ;;  %v1759_v11 = vsel %vm383_vm0, %v1755_v3, %v1758_v33  ;;  %v4910_v54 = vld [vmem:[#allocation71_spill] sm:$0xff] }
 0x1f3   : > { %v969_v22 = vpop.permute.xlu1 %968  ;;  %2363 = vmatmul.mubr.msk.bf16.gmra.mxu0 %vm1923_vm10, %v1759_v11  ;;  %v4911_v11 = vld [vmem:[#allocation94_spill] sm:$0xff] }
 0x1f4   : > { %v937_v35 = vpop.permute.xlu0 %936  ;;  %v1510_v44 = vsel %vm1460_vm5, %v1445_v59, %v969_v22 }
 0x1f5   : > { %1130 = vrot.lane.b32.xlu1 %v1067_v63, %s2525_s26  ;;  %v1478_v19 = vsel %vm1460_vm5, %v1413_v17, %v937_v35  ;;  %v1415_v35 = vsel %vm1395_vm6, %v4911_v11, %v4910_v54  ;;  %v4917_v11 = vld [vmem:[#allocation70_spill] sm:$0xff] }
 0x1f6   : > { %1098 = vrot.lane.b32.xlu0 %v4898_v43, %s2525_s26 }
 0x1f7   : > { %v941_v57 = vpop.permute.xlu1 %940 }
 0x1f8   : > { %v905_v49 = vpop.permute.xlu0 %904 }
 0x1f9   : > { %1192 = vrot.lane.b32.xlu1 %v4062_v56, %s2526_s29  ;;  %v1135_v56 = vor.u32 %v1134_v30, %v1059_v15  ;;  %v1447_v63 = vsel %vm1395_vm6, %v4909_v52, %v905_v49 }
 0x1fa   : > { %1160 = vrot.lane.b32.xlu0 %v4888_v26, %s2526_s29 }
 0x1fb   : > { %v1009_v25 = vpop.permute.xlu1 %1008 }
 0x1fc   : > { %v973_v16 = vpop.permute.xlu0 %972  ;;  %v1543_v45 = vsel %vm1525_vm8, %v1478_v19, %v1009_v25 }
 0x1fd   : > { %1054 = vrot.lane.b32.xlu1 %v4111_v1, %s2524_s25  ;;  %v1514_v48 = vsel %vm1460_vm5, %v1449_v41, %v973_v16 }
 0x1fe   : > { %1022 = vrot.lane.b32.xlu0 %v4899_v39, %s2524_s25 }
 0x1ff   : > { %v4211_v60 = vpop.permute.xlu1 %908 }
 0x200   : > { %v1041_v26 = vpop.permute.xlu0 %1040 }
 0x201   : > { %1128 = vrot.lane.b32.xlu1 %v852_v2, %s2525_s26  ;;  %v1575_v42 = vsel %vm1525_vm8, %v1510_v44, %v1041_v26  ;;  %v4912_v26 = vld [vmem:[#allocation44_spill] sm:$0xff] }
 0x202   : > { %1096 = vrot.lane.b32.xlu0 %v4889_v14, %s2525_s26  ;;  %v1451_v49 = vsel %vm1395_vm6, %v4912_v26, %v4211_v60 }
 0x203   : > { %v971_v31 = vpop.permute.xlu1 %970 }
 0x204   : > { %v939_v21 = vpop.permute.xlu0 %938  ;;  %v1512_v43 = vsel %vm1460_vm5, %v1447_v63, %v971_v31  ;;  %v4916_v63 = vld [vmem:[#allocation61_spill] sm:$0xff] }
 0x205   : > { %1196 = vrot.lane.b32.xlu1 %v1135_v56, %s2526_s29  ;;  %v1480_v31 = vsel %vm1460_vm5, %v1415_v35, %v939_v21 }
 0x206   : > { %1164 = vrot.lane.b32.xlu0 %v4900_v24, %s2526_s29 }
 0x207   : > { %v1045_v32 = vpop.permute.xlu1 %1044 }
 0x208   : > { %v1013_v20 = vpop.permute.xlu0 %1012  ;;  %v1579_v4 = vsel %vm1525_vm8, %v1514_v48, %v1045_v32 }
 0x209   : > { %1132 = vrot.lane.b32.xlu1 %v1068_v50, %s2525_s26 }
 0x20a   : > { %1100 = vrot.lane.b32.xlu0 %v4901_v53, %s2525_s26 }
 0x20b   : > { %v1119_v2 = vpop.permute.xlu1 %1118 }
 0x20c   : > { %v1087_v15 = vpop.permute.xlu0 %1086  ;;  %v1640_v29 = vsel %vm1590_vm7, %v1575_v42, %v1119_v2 }
 0x20d   : > { %1194 = vrot.lane.b32.xlu1 %v4053_v12, %s2526_s29  ;;  %v1608_v9 = vsel %vm1590_vm7, %v1543_v45, %v1087_v15 }
 0x20e   : > { %1162 = vrot.lane.b32.xlu0 %v4896_v55, %s2526_s29  ;;  %v4907_v55 = vld [vmem:[#allocation72_spill] sm:$0xff] }
 0x20f   : > { %v975_v14 = vpop.permute.xlu1 %974  ;;  %v1417_v5 = vsel %vm1395_vm6, %v4908_v18, %v4907_v55 }
 0x210   : > { %v4234_v1 = vpop.permute.xlu0 %942  ;;  %v1482_v33 = vsel %vm1460_vm5, %v1417_v5, %v941_v57 }
 0x211   : > { %1198 = vrot.lane.b32.xlu1 %v1134_v30, %s2526_s29  ;;  %v1547_v25 = vsel %vm1525_vm8, %v1482_v33, %v1013_v20  ;;  %v1516_v20 = vsel %vm1460_vm5, %v1451_v49, %v975_v14 }
 0x212   : > { %1166 = vrot.lane.b32.xlu0 %v4902_v40, %s2526_s29  ;;  %v4914_v40 = vld [vmem:[#allocation95_spill] sm:$0xff] }
 0x213   : > { %v1043_v28 = vpop.permute.xlu1 %1042 }
 0x214   : > { %v1011_v10 = vpop.permute.xlu0 %1010  ;;  %v1577_v30 = vsel %vm1525_vm8, %v1512_v43, %v1043_v28  ;;  %v4913_v28 = vld [vmem:[#allocation33_spill] sm:$0xff] }
 0x217   : > { %v1123_v51 = vpop.permute.xlu1 %1122 }
 0x218   : > { %v1091_v8 = vpop.permute.xlu0 %1090  ;;  %v1644_v37 = vsel %vm1590_vm7, %v1579_v4, %v1123_v51  ;;  %v1419_v51 = vsel %vm1395_vm6, %v4914_v40, %v4913_v28 }
 0x219   : > { %v1612_v16 = vsel %vm1590_vm7, %v1547_v25, %v1091_v8  ;;  %v1545_v8 = vsel %vm1525_vm8, %v1480_v31, %v1011_v10  ;;  %v1484_v47 = vsel %vm1460_vm5, %v1419_v51, %v4234_v1 }
 0x21b   : > { %v1185_v36 = vpop.permute.xlu1 %1184 }
 0x21c   : > { %v1153_v62 = vpop.permute.xlu0 %1152  ;;  %v1705_v38 = vsel %vm1655_vm9, %v1640_v29, %v1185_v36 }
 0x21d   : > { %v1842_v7 = vshll.u32 %v1705_v38, 16  ;;  %v1673_v46 = vsel %vm1655_vm9, %v1608_v9, %v1153_v62  ;;  %v1840_v53 = vshrl.u32 %v1705_v38, 16 }
 0x21e   : > { %v1762_v56 = vshll.u32 %v1673_v46, 16  ;;  %v1760_v10 = vshrl.u32 %v1673_v46, 16 }
 0x21f   : > { %v1047_v23 = vpop.permute.xlu1 %1046  ;;  %v1844_v39 = vrot.slane %v1842_v7, 1 }
 0x220   : > { %v1015_v12 = vpop.permute.xlu0 %1014  ;;  %v1581_v60 = vsel %vm1525_vm8, %v1516_v20, %v1047_v23  ;;  %v1764_v58 = vrot.slane %v1762_v56, 1 }
 0x221   : > { %v1845_v62 = vor.u32 %v1844_v39, %v1840_v53  ;;  %v1549_v38 = vsel %vm1525_vm8, %v1484_v47, %v1015_v12  ;;  %v4915_v12 = vld [vmem:[#allocation69_spill] sm:$0xff] }
 0x222   : > { %v1765_v41 = vor.u32 %v1764_v58, %v1760_v10 }
 0x223   : > { %v1121_v0 = vpop.permute.xlu1 %1120 }
 0x224   : > { %v1089_v61 = vpop.permute.xlu0 %1088  ;;  %v1642_v50 = vsel %vm1590_vm7, %v1577_v30, %v1121_v0  ;;  %v4918_v30 = vld [vmem:[#allocation63_spill] sm:$0xff] }
 0x225   : > { %v1610_v59 = vsel %vm1590_vm7, %v1545_v8, %v1089_v61 }
 0x227   : > { %v1189_v27 = vpop.permute.xlu1 %1188 }
 0x228   : > { %v1157_v34 = vpop.permute.xlu0 %1156  ;;  %v1709_v22 = vsel %vm1655_vm9, %v1644_v37, %v1189_v27 }
 0x229   : > { %v1852_v32 = vshll.u32 %v1709_v22, 16  ;;  %v1677_v24 = vsel %vm1655_vm9, %v1612_v16, %v1157_v34  ;;  %v1850_v27 = vshrl.u32 %v1709_v22, 16 }
 0x22a   : > { %v1772_v0 = vshll.u32 %v1677_v24, 16  ;;  %v1770_v55 = vshrl.u32 %v1677_v24, 16 }
 0x22b   : > { %v1125_v3 = vpop.permute.xlu1 %1124  ;;  %v1854_v44 = vrot.slane %v1852_v32, 1 }
 0x22c   : > { %v1093_v57 = vpop.permute.xlu0 %1092  ;;  %v1646_v14 = vsel %vm1590_vm7, %v1581_v60, %v1125_v3  ;;  %v1774_v19 = vrot.slane %v1772_v0, 1 }
 0x22d   : > { %v1614_v45 = vsel %vm1590_vm7, %v1549_v38, %v1093_v57  ;;  %v1855_v9 = vor.u32 %v1854_v44, %v1850_v27 }
 0x22e   : > { %v1775_v3 = vor.u32 %v1774_v19, %v1770_v55 }
 0x22f   : > { %v1187_v2 = vpop.permute.xlu1 %1186 }
 0x230   : > { %v1707_v15 = vsel %vm1655_vm9, %v1642_v50, %v1187_v2  ;;  %v1155_v21 = vpop.permute.xlu0 %1154 }
 0x231   : > { %v1846_v36 = vshll.u32 %v1707_v15, 16  ;;  %v1675_v29 = vsel %vm1655_vm9, %v1610_v59, %v1155_v21  ;;  %v4343_v59 = vld [vmem:[%s4520_s2] ss:$0 sm:$0xff] }
 0x232   : > { %v1766_v17 = vshll.u32 %v1675_v29, 16 }
 0x233   : > { %v1848_v42 = vrot.slane %v1846_v36, 1  ;;  %v1191_v13 = vpop.permute.xlu1 %1190 }
 0x234   : > { %v1711_v23 = vsel %vm1655_vm9, %v1646_v14, %v1191_v13  ;;  %v1768_v48 = vrot.slane %v1766_v17, 1  ;;  %v1159_v4 = vpop.permute.xlu0 %1158 }
 0x235   : > { %v1856_v61 = vshll.u32 %v1711_v23, 16  ;;  %v1849_v6 = vsel %vm383_vm0, %v1845_v62, %v1848_v42  ;;  %v1679_v7 = vsel %vm1655_vm9, %v1614_v45, %v1159_v4 }
 0x236   : > { %2382 = vmatprep.mubr.msk.bf16.mxu1 %vm1923_vm10, %v1849_v6  ;;  %v1776_v18 = vshll.u32 %v1679_v7, 16  ;;  %v1769_v37 = vsel %vm383_vm0, %v1765_v41, %v1768_v48 }
 0x237   : > { %v1858_v1 = vrot.slane %v1856_v61, 1  ;;  %v911_v34 = vpop.permute.xlu1 %910  ;;  %2366 = vmatprep.mubr.msk.bf16.mxu0 %vm1923_vm10, %v1769_v37 }
 0x238   : > { %v4297_v5 = vsel %vm1395_vm6, %v4915_v12, %v911_v34  ;;  %v1778_v33 = vrot.slane %v1776_v18, 1  ;;  %v879_v52 = vpop.permute.xlu0 %878 }
 0x239   : > { %v1859_v46 = vsel %vm383_vm0, %v1855_v9, %v1858_v1  ;;  %v4305_v22 = vsel %vm1395_vm6, %v4916_v63, %v879_v52 }
 0x23a   : > { %2383 = vmatmul.mubr.msk.bf16.gmra.mxu1 %vm1923_vm10, %v1859_v46  ;;  %v1779_v43 = vsel %vm383_vm0, %v1775_v3, %v1778_v33 }
 0x23b   : > { %v915_v54 = vpop.permute.xlu1 %914  ;;  %2367 = vmatmul.mubr.msk.bf16.gmra.mxu0 %vm1923_vm10, %v1779_v43 }
 0x23c   : > { %v4309_v35 = vsel %vm1395_vm6, %v4917_v11, %v915_v54  ;;  %v883_v25 = vpop.permute.xlu0 %882 }
 0x23d   : > { %v4315_v16 = vsel %vm1395_vm6, %v4918_v30, %v883_v25  ;;  %v4919_v30 = vld [vmem:[#allocation22_spill] sm:$0xff] }
 0x23f   : > { %v977_v39 = vpop.permute.xlu1 %976 }
 0x240   : > { %v945_v56 = vpop.permute.xlu0 %944  ;;  %v1518_v1 = vsel %vm1460_vm5, %v4297_v5, %v977_v39 }
 0x241   : > { %v1486_v46 = vsel %vm1460_vm5, %v4305_v22, %v945_v56  ;;  %v4920_v56 = vld [vmem:[#allocation60_spill] sm:$0xff] }
 0x243   : > { %v4317_v57 = vpop.permute.xlu1 %912 }
 0x244   : > { %v4319_v26 = vpop.permute.xlu0 %880  ;;  %v1455_v22 = vsel %vm1395_vm6, %v4919_v30, %v4317_v57 }
 0x247   : > { %v981_v49 = vpop.permute.xlu1 %980 }
 0x248   : > { %v4321_v50 = vpop.permute.xlu0 %948  ;;  %v1522_v5 = vsel %vm1460_vm5, %v4309_v35, %v981_v49  ;;  %v1423_v49 = vsel %vm1395_vm6, %v4920_v56, %v4319_v26 }
 0x249   : > { %v1490_v35 = vsel %vm1460_vm5, %v4315_v16, %v4321_v50  ;;  %v4921_v16 = vld [vmem:[#allocation13_spill] sm:$0xff] }
 0x24b   : > { %v1049_v32 = vpop.permute.xlu1 %1048 }
 0x24c   : > { %v1017_v24 = vpop.permute.xlu0 %1016  ;;  %v1583_v34 = vsel %vm1525_vm8, %v1518_v1, %v1049_v32 }
 0x24d   : > { %v1551_v3 = vsel %vm1525_vm8, %v1486_v46, %v1017_v24 }
 0x24f   : > { %v4323_v2 = vpop.permute.xlu1 %916 }
 0x250   : > { %v4325_v31 = vpop.permute.xlu0 %884  ;;  %v1459_v50 = vsel %vm1395_vm6, %v4921_v16, %v4323_v2 }
 0x253   : > { %v4327_v20 = vpop.permute.xlu1 %978 }
 0x254   : > { %v4329_v53 = vpop.permute.xlu0 %946  ;;  %v1520_v32 = vsel %vm1460_vm5, %v1455_v22, %v4327_v20 }
 0x257   : > { %v1053_v15 = vpop.permute.xlu1 %1052 }
 0x258   : > { %v4331_v28 = vpop.permute.xlu0 %1020  ;;  %v1587_v33 = vsel %vm1525_vm8, %v1522_v5, %v1053_v15 }
 0x259   : > { %v1555_v24 = vsel %vm1525_vm8, %v1490_v35, %v4331_v28  ;;  %v1488_v28 = vsel %vm1460_vm5, %v1423_v49, %v4329_v53 }
 0x25b   : > { %v1127_v40 = vpop.permute.xlu1 %1126 }
 0x25c   : > { %v1095_v51 = vpop.permute.xlu0 %1094  ;;  %v1648_v55 = vsel %vm1590_vm7, %v1583_v34, %v1127_v40 }
 0x25d   : > { %v1616_v52 = vsel %vm1590_vm7, %v1551_v3, %v1095_v51 }
 0x25f   : > { %v4333_v8 = vpop.permute.xlu1 %982 }
 0x260   : > { %v4335_v60 = vpop.permute.xlu0 %950 }
 0x263   : > { %v1051_v36 = vpop.permute.xlu1 %1050 }
 0x264   : > { %v4337_v62 = vpop.permute.xlu0 %1018  ;;  %v1585_v15 = vsel %vm1525_vm8, %v1520_v32, %v1051_v36  ;;  %v1524_v36 = vsel %vm1460_vm5, %v1459_v50, %v4333_v8 }
 0x265   : > { %v1553_v2 = vsel %vm1525_vm8, %v1488_v28, %v4337_v62 }
 0x267   : > { %v1131_v58 = vpop.permute.xlu1 %1130 }
 0x268   : > { %v1099_v0 = vpop.permute.xlu0 %1098  ;;  %v1652_v11 = vsel %vm1590_vm7, %v1587_v33, %v1131_v58 }
 0x269   : > { %v1620_v57 = vsel %vm1590_vm7, %v1555_v24, %v1099_v0 }
 0x26a   : > { %v2376_v21 = vpop.f32.mrf.mxu1 }
 0x26b   : > { %v2083_v44 = vadd.f32 %v2376_v21, %v4343_v59  ;;  %v1193_v14 = vpop.permute.xlu1 %1192  ;;  %v2360_v29 = vpop.f32.mrf.mxu0 }
 0x26c   : > { %v2074_v42 = vpop.f32.mrf.mxu1  ;;  %v2019_v47 = vadd.f32 %v2360_v29, %v4343_v59  ;;  %v1161_v10 = vpop.permute.xlu0 %1160  ;;  %v1713_v12 = vsel %vm1655_vm9, %v1648_v55, %v1193_v14 }
 0x26d   : > { %2155 = vst.msk [vmem:[%s4348_s20 + $0x90] sm:$0xff] %vm1200_vm1, %v2083_v44  ;;  %v2075_v13 = vadd.f32 %v4343_v59, %v2074_v42  ;;  %v2010_v23 = vpop.f32.mrf.mxu0  ;;  %v1862_v63 = vshll.u32 %v1713_v12, 16  ;;  %v1681_v43 = vsel %vm1655_vm9, %v1616_v52, %v1161_v10  ;;  %v1860_v0 = vshrl.u32 %v1713_v12, 16  ;;  %v4922_v42 = vld [vmem:[#allocation62_spill] sm:$0xff] }
 0x26e   : > { %v2377_v17 = vpop.f32.mrf.mxu1  ;;  %2139 = vst.msk [vmem:[%s4348_s20 + $0x10] sm:$0xff] %vm1200_vm1, %v2019_v47  ;;  %v2011_v61 = vadd.f32 %v4343_v59, %v2010_v23  ;;  %v1782_v51 = vshll.u32 %v1681_v43, 16  ;;  %v1427_v29 = vsel %vm1395_vm6, %v4922_v42, %v4325_v31  ;;  %v1780_v62 = vshrl.u32 %v1681_v43, 16 }
 0x26f   : > { %2153 = vst.msk [vmem:[%s4348_s20 + $0x80] sm:$0xff] %vm1200_vm1, %v2075_v13  ;;  %v2086_v38 = vadd.f32 %v2377_v17, %v4343_v59  ;;  %v1055_v27 = vpop.permute.xlu1 %1054  ;;  %v2361_v41 = vpop.f32.mrf.mxu0  ;;  %v1864_v40 = vrot.slane %v1862_v63, 1  ;;  %v1492_v31 = vsel %vm1460_vm5, %v1427_v29, %v4335_v60 }
 0x270   : > { %v2077_v6 = vpop.f32.mrf.mxu1  ;;  %2137 = vst.msk [vmem:[%s4348_s20] sm:$0xff] %vm1200_vm1, %v2011_v61  ;;  %v2022_v45 = vadd.f32 %v2361_v41, %v4343_v59  ;;  %v1023_v48 = vpop.permute.xlu0 %1022  ;;  %v1589_v13 = vsel %vm1525_vm8, %v1524_v36, %v1055_v27  ;;  %v1784_v17 = vrot.slane %v1782_v51, 1 }
 0x271   : > { %2156 = vst.msk [vmem:[%s4348_s20 + $0x98] sm:$0xff] %vm1200_vm1, %v2086_v38  ;;  %v2078_v19 = vadd.f32 %v4343_v59, %v2077_v6  ;;  %v2013_v4 = vpop.f32.mrf.mxu0  ;;  %v1865_v10 = vor.u32 %v1864_v40, %v1860_v0 }
 0x272   : > { %2140 = vst.msk [vmem:[%s4348_s20 + $0x18] sm:$0xff] %vm1200_vm1, %v2022_v45  ;;  %v2014_v7 = vadd.f32 %v4343_v59, %v2013_v4  ;;  %v1557_v4 = vsel %vm1525_vm8, %v1492_v31, %v1023_v48  ;;  %v1785_v34 = vor.u32 %v1784_v17, %v1780_v62 }
 0x273   : > { %2154 = vst.msk [vmem:[%s4348_s20 + $0x88] sm:$0xff] %vm1200_vm1, %v2078_v19  ;;  %v1129_v9 = vpop.permute.xlu1 %1128 }
 0x274   : > { %2138 = vst.msk [vmem:[%s4348_s20 + $0x8] sm:$0xff] %vm1200_vm1, %v2014_v7  ;;  %v1097_v18 = vpop.permute.xlu0 %1096  ;;  %v1650_v21 = vsel %vm1590_vm7, %v1585_v15, %v1129_v9 }
 0x275   : > { %v1618_v53 = vsel %vm1590_vm7, %v1553_v2, %v1097_v18 }
 0x277   : > { %v1197_v37 = vpop.permute.xlu1 %1196 }
 0x278   : > { %v1165_v54 = vpop.permute.xlu0 %1164  ;;  %v1717_v39 = vsel %vm1655_vm9, %v1652_v11, %v1197_v37 }
 0x279   : > { %v1872_v26 = vshll.u32 %v1717_v39, 16  ;;  %v1685_v44 = vsel %vm1655_vm9, %v1620_v57, %v1165_v54  ;;  %v1870_v9 = vshrl.u32 %v1717_v39, 16 }
 0x27a   : > { %v1792_v23 = vshll.u32 %v1685_v44, 16  ;;  %v1790_v3 = vshrl.u32 %v1685_v44, 16 }
 0x27b   : > { %v1133_v25 = vpop.permute.xlu1 %1132  ;;  %v1874_v8 = vrot.slane %v1872_v26, 1 }
 0x27c   : > { %v1101_v58 = vpop.permute.xlu0 %1100  ;;  %v1654_v61 = vsel %vm1590_vm7, %v1589_v13, %v1133_v25  ;;  %v1794_v55 = vrot.slane %v1792_v23, 1 }
 0x27d   : > { %v1622_v18 = vsel %vm1590_vm7, %v1557_v4, %v1101_v58  ;;  %v1875_v46 = vor.u32 %v1874_v8, %v1870_v9 }
 0x27e   : > { %v1795_v63 = vor.u32 %v1794_v55, %v1790_v3 }
 0x27f   : > { %v1195_v20 = vpop.permute.xlu1 %1194 }
 0x280   : > { %v1715_v14 = vsel %vm1655_vm9, %v1650_v21, %v1195_v20  ;;  %v1163_v38 = vpop.permute.xlu0 %1162 }
 0x281   : > { %v1866_v47 = vshll.u32 %v1715_v14, 16  ;;  %v1683_v41 = vsel %vm1655_vm9, %v1618_v53, %v1163_v38 }
 0x282   : > { %v1786_v45 = vshll.u32 %v1683_v41, 16 }
 0x283   : > { %v1868_v6 = vrot.slane %v1866_v47, 1  ;;  %v1199_v19 = vpop.permute.xlu1 %1198 }
 0x284   : > { %v1719_v27 = vsel %vm1655_vm9, %v1654_v61, %v1199_v19  ;;  %v1788_v12 = vrot.slane %v1786_v45, 1  ;;  %v1167_v37 = vpop.permute.xlu0 %1166 }
 0x285   : > { %v1876_v1 = vshll.u32 %v1719_v27, 16  ;;  %v1869_v7 = vsel %vm383_vm0, %v1865_v10, %v1868_v6  ;;  %v1687_v5 = vsel %vm1655_vm9, %v1622_v18, %v1167_v37 }
 0x286   : > { %2386 = vmatprep.mubr.msk.bf16.mxu1 %vm1923_vm10, %v1869_v7  ;;  %v1796_v33 = vshll.u32 %v1687_v5, 16  ;;  %v1789_v48 = vsel %vm383_vm0, %v1785_v34, %v1788_v12 }
 0x287   : > { %v1878_v60 = vrot.slane %v1876_v1, 1  ;;  %2370 = vmatprep.mubr.msk.bf16.mxu0 %vm1923_vm10, %v1789_v48 }
 0x288   : > { %v1798_v54 = vrot.slane %v1796_v33, 1 }
 0x289   : > { %v1879_v52 = vsel %vm383_vm0, %v1875_v46, %v1878_v60 }
 0x28a   : > { %2387 = vmatmul.mubr.msk.bf16.gmra.mxu1 %vm1923_vm10, %v1879_v52  ;;  %v1799_v11 = vsel %vm383_vm0, %v1795_v63, %v1798_v54 }
 0x28b   : > { %2371 = vmatmul.mubr.msk.bf16.gmra.mxu0 %vm1923_vm10, %v1799_v11 }
 0x2b2   : > { %v2380_v43 = vpop.f32.mrf.mxu1 }
 0x2b3   : > { %v2099_v25 = vadd.f32 %v2380_v43, %v4343_v59  ;;  %v2364_v22 = vpop.f32.mrf.mxu0 }
 0x2b4   : > { %v2090_v30 = vpop.f32.mrf.mxu1  ;;  %v2035_v39 = vadd.f32 %v2364_v22, %v4343_v59 }
 0x2b5   : > { %2159 = vst.msk [vmem:[%s4348_s20 + $0xb0] sm:$0xff] %vm1200_vm1, %v2099_v25  ;;  %v2091_v35 = vadd.f32 %v4343_v59, %v2090_v30  ;;  %v2026_v49 = vpop.f32.mrf.mxu0 }
 0x2b6   : > { %v2381_v56 = vpop.f32.mrf.mxu1  ;;  %2143 = vst.msk [vmem:[%s4348_s20 + $0x30] sm:$0xff] %vm1200_vm1, %v2035_v39  ;;  %v2027_v24 = vadd.f32 %v4343_v59, %v2026_v49 }
 0x2b7   : > { %2157 = vst.msk [vmem:[%s4348_s20 + $0xa0] sm:$0xff] %vm1200_vm1, %v2091_v35  ;;  %v2102_v32 = vadd.f32 %v2381_v56, %v4343_v59  ;;  %v2365_v57 = vpop.f32.mrf.mxu0 }
 0x2b8   : > { %v2093_v15 = vpop.f32.mrf.mxu1  ;;  %2141 = vst.msk [vmem:[%s4348_s20 + $0x20] sm:$0xff] %vm1200_vm1, %v2027_v24  ;;  %v2038_v51 = vadd.f32 %v2365_v57, %v4343_v59 }
 0x2b9   : > { %2160 = vst.msk [vmem:[%s4348_s20 + $0xb8] sm:$0xff] %vm1200_vm1, %v2102_v32  ;;  %v2094_v40 = vadd.f32 %v4343_v59, %v2093_v15  ;;  %v2029_v58 = vpop.f32.mrf.mxu0 }
 0x2ba   : > { %2144 = vst.msk [vmem:[%s4348_s20 + $0x38] sm:$0xff] %vm1200_vm1, %v2038_v51  ;;  %v2030_v16 = vadd.f32 %v4343_v59, %v2029_v58 }
 0x2bb   : > { %2158 = vst.msk [vmem:[%s4348_s20 + $0xa8] sm:$0xff] %vm1200_vm1, %v2094_v40 }
 0x2bc   : > { %2142 = vst.msk [vmem:[%s4348_s20 + $0x28] sm:$0xff] %vm1200_vm1, %v2030_v16 }
 0x2fa   : > { %v2384_v50 = vpop.f32.mrf.mxu1 }
 0x2fb   : > { %v2115_v21 = vadd.f32 %v2384_v50, %v4343_v59  ;;  %v2368_v44 = vpop.f32.mrf.mxu0 }
 0x2fc   : > { %v2106_v26 = vpop.f32.mrf.mxu1  ;;  %v2051_v28 = vadd.f32 %v2368_v44, %v4343_v59 }
 0x2fd   : > { %2163 = vst.msk [vmem:[%s4348_s20 + $0xd0] sm:$0xff] %vm1200_vm1, %v2115_v21  ;;  %v2107_v20 = vadd.f32 %v4343_v59, %v2106_v26  ;;  %v2042_v0 = vpop.f32.mrf.mxu0 }
 0x2fe   : > { %v2385_v36 = vpop.f32.mrf.mxu1  ;;  %2147 = vst.msk [vmem:[%s4348_s20 + $0x50] sm:$0xff] %vm1200_vm1, %v2051_v28  ;;  %v2043_v42 = vadd.f32 %v4343_v59, %v2042_v0 }
 0x2ff   : > { %2161 = vst.msk [vmem:[%s4348_s20 + $0xc0] sm:$0xff] %vm1200_vm1, %v2107_v20  ;;  %v2118_v14 = vadd.f32 %v2385_v36, %v4343_v59  ;;  %v2369_v2 = vpop.f32.mrf.mxu0 }
 0x300   : > { %v2109_v29 = vpop.f32.mrf.mxu1  ;;  %2145 = vst.msk [vmem:[%s4348_s20 + $0x40] sm:$0xff] %vm1200_vm1, %v2043_v42  ;;  %v2054_v47 = vadd.f32 %v2369_v2, %v4343_v59 }
 0x301   : > { %2164 = vst.msk [vmem:[%s4348_s20 + $0xd8] sm:$0xff] %vm1200_vm1, %v2118_v14  ;;  %v2110_v13 = vadd.f32 %v4343_v59, %v2109_v29  ;;  %v2045_v10 = vpop.f32.mrf.mxu0 }
 0x302   : > { %2148 = vst.msk [vmem:[%s4348_s20 + $0x58] sm:$0xff] %vm1200_vm1, %v2054_v47  ;;  %v2046_v17 = vadd.f32 %v4343_v59, %v2045_v10 }
 0x303   : > { %2162 = vst.msk [vmem:[%s4348_s20 + $0xc8] sm:$0xff] %vm1200_vm1, %v2110_v13 }
 0x304   : > { %2146 = vst.msk [vmem:[%s4348_s20 + $0x48] sm:$0xff] %vm1200_vm1, %v2046_v17 }
 0x34a   : > { %v2388_v53 = vpop.f32.mrf.mxu1 }
 0x34b   : > { %v2131_v23 = vadd.f32 %v2388_v53, %v4343_v59  ;;  %v2372_v8 = vpop.f32.mrf.mxu0 }
 0x34c   : > { %v2122_v38 = vpop.f32.mrf.mxu1  ;;  %v2067_v6 = vadd.f32 %v2372_v8, %v4343_v59 }
 0x34d   : > { %2167 = vst.msk [vmem:[%s4348_s20 + $0xf0] sm:$0xff] %vm1200_vm1, %v2131_v23  ;;  %v2123_v61 = vadd.f32 %v4343_v59, %v2122_v38  ;;  %v2058_v19 = vpop.f32.mrf.mxu0 }
 0x34e   : > { %v2389_v41 = vpop.f32.mrf.mxu1  ;;  %2151 = vst.msk [vmem:[%s4348_s20 + $0x70] sm:$0xff] %vm1200_vm1, %v2067_v6  ;;  %v2059_v62 = vadd.f32 %v4343_v59, %v2058_v19 }
 0x34f   : > { %2165 = vst.msk [vmem:[%s4348_s20 + $0xe0] sm:$0xff] %vm1200_vm1, %v2123_v61  ;;  %v2134_v31 = vadd.f32 %v2389_v41, %v4343_v59  ;;  %v2373_v27 = vpop.f32.mrf.mxu0 }
 0x350   : > { %v2125_v45 = vpop.f32.mrf.mxu1  ;;  %2149 = vst.msk [vmem:[%s4348_s20 + $0x60] sm:$0xff] %vm1200_vm1, %v2059_v62  ;;  %v2070_v9 = vadd.f32 %v2373_v27, %v4343_v59 }
 0x351   : > { %2168 = vst.msk [vmem:[%s4348_s20 + $0xf8] sm:$0xff] %vm1200_vm1, %v2134_v31  ;;  %v2126_v4 = vadd.f32 %v4343_v59, %v2125_v45  ;;  %v2061_v1 = vpop.f32.mrf.mxu0 }
 0x352   : > { %2152 = vst.msk [vmem:[%s4348_s20 + $0x78] sm:$0xff] %vm1200_vm1, %v2070_v9  ;;  %v2062_v7 = vadd.f32 %v4343_v59, %v2061_v1 }
 0x353   : > { %2166 = vst.msk [vmem:[%s4348_s20 + $0xe8] sm:$0xff] %vm1200_vm1, %v2126_v4 }
 0x354   : > { %2150 = vst.msk [vmem:[%s4348_s20 + $0x68] sm:$0xff] %vm1200_vm1, %v2062_v7 }
 0x355 PF: > { %s13_s14 = sadd.s32 1, %s2517_s14   ;;  %s4923_s12 = smov %s2513_s13 }
 0x356   : > { %p10_p5 = scmp.ge.s32.totalorder %s13_s14, 4   ;;  %s4924_s13 = smov %s4926_s15 }
 0x358   :  { %12 = sbr.rel (!%p10_p5) target bundleno = 2 (0x2), region = 63 }

</bundles_post_ra>
